<compile_context>
chip_gen: v5e
topology: v5e:2x2
jax: 0.10.0
libtpu: 0.0.40
codegen_flags: <defaults>
</compile_context>

<pallas_src>
import functools

import jax
import jax.numpy as jnp
from jax.experimental import pallas as pl
from jax.experimental.pallas import tpu as pltpu

EPS = 1e-5
MLP_CHUNK = 512                # how much of the 4*D hidden dim is live at once


# ----------------------------- kernel helpers ------------------------------

def _layernorm(x, w, b):
    mu = jnp.mean(x, axis=-1, keepdims=True)
    var = jnp.mean((x - mu) ** 2, axis=-1, keepdims=True)
    return (x - mu) * jax.lax.rsqrt(var + EPS) * w + b


# ------------------------------ Pallas kernels ------------------------------

def encoder_kernel(x_ref, pos_ref, ln1w, ln1b, wqkv, bqkv, wo, bo,
                   ln2w, ln2b, w1, b1, w2, b2,
                   o_ref,
                   q_sc, k_sc, v_sc, heads_sc, acc_sc, res_sc,
                   *, num_heads):
    Bt, S, D = o_ref.shape
    M = Bt * S
    H = num_heads
    Dh = D // H
    scale = 1.0 / (Dh ** 0.5)          # Python float -> jaxpr literal
    l = pl.program_id(1)

    # Layer 0: initialise the resident residual stream with prompts + pos-emb.
    @pl.when(l == 0)
    def _init():
        res_sc[...] = x_ref[...] + pos_ref[...]

    # ---------------- attention ----------------
    x = res_sc[...].reshape(M, D)                       # f32 residual
    xn = _layernorm(x, ln1w[0, 0], ln1b[0, 0])
    qkv = jnp.dot(xn.astype(jnp.bfloat16), wqkv[0],
                  preferred_element_type=jnp.float32) + bqkv[0, 0]

    # Stage q/k/v as bf16 in VMEM (bounds live ranges; fold attn scale into q).
    q_sc[...] = (qkv[:, 0:D] * scale).astype(jnp.bfloat16).reshape(Bt, S, D)
    k_sc[...] = qkv[:, D:2 * D].astype(jnp.bfloat16).reshape(Bt, S, D)
    v_sc[...] = qkv[:, 2 * D:3 * D].astype(jnp.bfloat16).reshape(Bt, S, D)

    row = jax.lax.broadcasted_iota(jnp.int32, (S, S), 0)
    col = jax.lax.broadcasted_iota(jnp.int32, (S, S), 1)
    causal_bias = jnp.where(col > row, -1e30, 0.0).astype(jnp.float32)

    @pl.loop(0, Bt)
    def _attend(bt):
        qb = q_sc[bt]                                   # (S, D) bf16
        kb = k_sc[bt]
        vb = v_sc[bt]
        outs = []
        for h in range(H):
            c0, c1 = h * Dh, (h + 1) * Dh
            s = jax.lax.dot_general(
                qb[:, c0:c1], kb[:, c0:c1], (((1,), (1,)), ((), ())),
                preferred_element_type=jnp.float32) + causal_bias
            s = s - jnp.max(s, axis=-1, keepdims=True)
            p = jnp.exp(s)
            p = p * pl.reciprocal(jnp.sum(p, axis=-1, keepdims=True), approx=True)
            outs.append(
                jnp.dot(p.astype(jnp.bfloat16), vb[:, c0:c1],
                        preferred_element_type=jnp.float32).astype(jnp.bfloat16))
        # One lane-dense (S, D) store instead of H masked Dh-wide stores.
        heads_sc[bt] = jnp.concatenate(outs, axis=-1)

    attn = jnp.dot(heads_sc[...].reshape(M, D), wo[0],
                   preferred_element_type=jnp.float32) + bo[0, 0]
    res_sc[...] = res_sc[...] + attn.reshape(Bt, S, D)

    # ---------------- MLP: Linear -> QuickGELU -> Linear ----------------
    xn2 = _layernorm(res_sc[...].reshape(M, D), ln2w[0, 0], ln2b[0, 0])
    q_sc[...] = xn2.astype(jnp.bfloat16).reshape(Bt, S, D)   # reuse q scratch
    acc_sc[...] = jnp.broadcast_to(b2[0, 0], (M, D))         # start from bias
    F4 = w1.shape[2]
    for f0 in range(0, F4, MLP_CHUNK):
        f1 = min(f0 + MLP_CHUNK, F4)
        h1 = jnp.dot(q_sc[...].reshape(M, D), w1[0, :, f0:f1],
                     preferred_element_type=jnp.float32) + b1[0, 0, f0:f1]
        h1 = h1 * jax.nn.sigmoid(1.702 * h1)                 # QuickGELU (f32 VPU)
        acc_sc[...] += jnp.dot(h1.astype(jnp.bfloat16), w2[0, f0:f1, :],
                               preferred_element_type=jnp.float32)
    res_sc[...] = res_sc[...] + acc_sc[...].reshape(Bt, S, D)

    # Write the residual back to HBM only once, after the last layer.
    @pl.when(l == pl.num_programs(1) - 1)
    def _writeout():
        o_ref[...] = res_sc[...]


def final_proj_kernel(eot_ref, x_ref, lnfw, lnfb, proj_ref, o_ref, rows_sc):
    # The EOT gather is done by the x BlockSpec index_map (only that row is
    # DMA'd); rows are stashed in VMEM and projected with ONE batched matmul.
    del eot_ref
    b = pl.program_id(0)
    rows_sc[pl.ds(b, 1), :] = x_ref[0]

    @pl.when(b == pl.num_programs(0) - 1)
    def _project():
        rown = _layernorm(rows_sc[...], lnfw[0], lnfb[0])
        o_ref[...] = jnp.dot(rown.astype(jnp.bfloat16), proj_ref[...],
                             preferred_element_type=jnp.float32)


# ------------------------------ pallas_call wrappers ------------------------

def _pick_block_b(B, S, D):
    # Largest batch tile whose f32 residual block stays under ~2 MiB.  Only
    # for larger batches do we insist on >= 2 grid steps (dual-TC sharding on
    # v7x); at small batch a single big tile is strictly better on v5e/v6e.
    budget = 2 * 1024 * 1024
    best = 1
    for bt in range(1, B + 1):
        if B % bt != 0:
            continue
        if bt * S * D * 4 > budget:
            continue
        if B >= 8 and B // bt < 2:
            continue
        best = bt
    return best


def encode_layers(prompts, params, num_heads):
    B, S, D = prompts.shape
    L = params["wqkv"].shape[0]
    F4 = params["w1"].shape[2]
    assert D % num_heads == 0
    Bt = _pick_block_b(B, S, D)

    def wspec(*trailing):       # per-layer weight: leading L dim indexed by l
        return pl.BlockSpec((1,) + tuple(trailing), lambda b, l: (l, 0, 0))

    in_specs = [
        pl.BlockSpec((Bt, S, D), lambda b, l: (b, 0, 0)),    # prompts
        pl.BlockSpec((S, D), lambda b, l: (0, 0)),           # positional emb
        wspec(1, D), wspec(1, D),                            # ln_1 w/b
        wspec(D, 3 * D), wspec(1, 3 * D),                    # qkv w/b
        wspec(D, D), wspec(1, D),                            # out-proj w/b
        wspec(1, D), wspec(1, D),                            # ln_2 w/b
        wspec(D, F4), wspec(1, F4),                          # mlp up w/b
        wspec(F4, D), wspec(1, D),                           # mlp down w/b
    ]

    return pl.pallas_call(
        functools.partial(encoder_kernel, num_heads=num_heads),
        out_shape=jax.ShapeDtypeStruct((B, S, D), jnp.float32),
        grid_spec=pltpu.PrefetchScalarGridSpec(
            num_scalar_prefetch=0,
            grid=(B // Bt, L),                               # layer axis innermost
            in_specs=in_specs,
            out_specs=pl.BlockSpec((Bt, S, D), lambda b, l: (b, 0, 0)),
            scratch_shapes=[
                pltpu.VMEM((Bt, S, D), jnp.bfloat16),        # q (pre-scaled)
                pltpu.VMEM((Bt, S, D), jnp.bfloat16),        # k
                pltpu.VMEM((Bt, S, D), jnp.bfloat16),        # v
                pltpu.VMEM((Bt, S, D), jnp.bfloat16),        # per-head outputs
                pltpu.VMEM((Bt * S, D), jnp.float32),        # MLP accumulator
                pltpu.VMEM((Bt, S, D), jnp.float32),         # resident residual
            ]),
        compiler_params=pltpu.CompilerParams(
            dimension_semantics=("parallel", "arbitrary"),
            vmem_limit_bytes=48 * 1024 * 1024),
    )(prompts, params["pos"],
      params["ln1w"], params["ln1b"], params["wqkv"], params["bqkv"],
      params["wo"], params["bo"], params["ln2w"], params["ln2b"],
      params["w1"], params["b1"], params["w2"], params["b2"])


def final_project(x, eot_idx, lnfw, lnfb, proj):
    B, S, D = x.shape
    P = proj.shape[1]
    gs = pltpu.PrefetchScalarGridSpec(
        num_scalar_prefetch=1, grid=(B,),
        in_specs=[pl.BlockSpec((1, 1, D), lambda b, eot: (b, eot[b], 0)),
                  pl.BlockSpec((1, D), lambda b, eot: (0, 0)),
                  pl.BlockSpec((1, D), lambda b, eot: (0, 0)),
                  pl.BlockSpec((D, P), lambda b, eot: (0, 0))],
        out_specs=pl.BlockSpec((B, P), lambda b, eot: (0, 0)),
        scratch_shapes=[pltpu.VMEM((B, D), jnp.float32)],
    )
    return pl.pallas_call(
        final_proj_kernel,
        out_shape=jax.ShapeDtypeStruct((B, P), jnp.float32),
        grid_spec=gs,
        compiler_params=pltpu.CompilerParams(
            dimension_semantics=("arbitrary",)),
    )(eot_idx, x, lnfw, lnfb, proj)


def text_encoder_forward(prompts, tokenized_prompts, params, num_heads):
    x = encode_layers(prompts, params, num_heads)
    eot = jnp.argmax(tokenized_prompts, axis=-1).astype(jnp.int32)
    return final_project(x, eot, params["lnfw"], params["lnfb"], params["proj"])


# ------------------------------ parameter setup -----------------------------

def init_params(key, *, seq, width, heads, layers, proj_dim):
    del heads
    D, L, F4 = width, layers, 4 * width
    keys = jax.random.split(key, 8)

    def nrm(k, shape):
        return 0.02 * jax.random.normal(k, shape, jnp.float32)

    return {
        "pos":  0.01 * jax.random.normal(keys[0], (seq, D), jnp.float32),
        "lnfw": jnp.ones((1, D), jnp.float32),
        "lnfb": jnp.zeros((1, D), jnp.float32),
        "proj": nrm(keys[1], (D, proj_dim)).astype(jnp.bfloat16),
        # per-layer weights stacked with a leading L dim (layer-indexed BlockSpec)
        "ln1w": jnp.ones((L, 1, D), jnp.float32),
        "ln1b": jnp.zeros((L, 1, D), jnp.float32),
        "wqkv": nrm(keys[2], (L, D, 3 * D)).astype(jnp.bfloat16),
        "bqkv": nrm(keys[3], (L, 1, 3 * D)),
        "wo":   nrm(keys[4], (L, D, D)).astype(jnp.bfloat16),
        "bo":   nrm(keys[5], (L, 1, D)),
        "ln2w": jnp.ones((L, 1, D), jnp.float32),
        "ln2b": jnp.zeros((L, 1, D), jnp.float32),
        "w1":   nrm(keys[6], (L, D, F4)).astype(jnp.bfloat16),
        "b1":   jnp.zeros((L, 1, F4), jnp.float32),
        "w2":   nrm(keys[7], (L, F4, D)).astype(jnp.bfloat16),
        "b2":   jnp.zeros((L, 1, D), jnp.float32),
    }


# ------------------------------ pure-JAX reference --------------------------

def _ref_ln(x, w, b):
    mu = x.mean(-1, keepdims=True)
    var = ((x - mu) ** 2).mean(-1, keepdims=True)
    return (x - mu) / jnp.sqrt(var + EPS) * w + b


def _ref_block(x, p, li, H):
    B, S, D = x.shape
    Dh = D // H
    xn = _ref_ln(x, p["ln1w"][li, 0], p["ln1b"][li, 0])
    qkv = xn @ p["wqkv"][li].astype(jnp.float32) + p["bqkv"][li, 0]
    q, k, v = jnp.split(qkv, 3, axis=-1)
    q = q.reshape(B, S, H, Dh).transpose(0, 2, 1, 3)
    k = k.reshape(B, S, H, Dh).transpose(0, 2, 1, 3)
    v = v.reshape(B, S, H, Dh).transpose(0, 2, 1, 3)
    mask = jnp.where(jnp.triu(jnp.ones((S, S)), 1) > 0, -jnp.inf, 0.0)
    s = jnp.einsum("bhqd,bhkd->bhqk", q, k) / jnp.sqrt(Dh) + mask
    a = jax.nn.softmax(s, axis=-1)
    o = jnp.einsum("bhqk,bhkd->bhqd", a, v).transpose(0, 2, 1, 3).reshape(B, S, D)
    x = x + o @ p["wo"][li].astype(jnp.float32) + p["bo"][li, 0]
    xn2 = _ref_ln(x, p["ln2w"][li, 0], p["ln2b"][li, 0])
    h = xn2 @ p["w1"][li].astype(jnp.float32) + p["b1"][li, 0]
    h = h * jax.nn.sigmoid(1.702 * h)
    return x + h @ p["w2"][li].astype(jnp.float32) + p["b2"][li, 0]


def ref_forward(prompts, tokenized_prompts, params, num_heads):
    x = prompts + params["pos"][None]
    for li in range(params["wqkv"].shape[0]):
        x = _ref_block(x, params, li, num_heads)
    x = _ref_ln(x, params["lnfw"][0], params["lnfb"][0])
    eot = jnp.argmax(tokenized_prompts, axis=-1)
    sel = x[jnp.arange(x.shape[0]), eot]
    return sel @ params["proj"].astype(jnp.float32)


# ----------------------------------- main ------------------------------------

if __name__ == "__main__":
    B, S, D, H, L, P = 4, 8, 32, 4, 2, 32

    key = jax.random.PRNGKey(0)
    kp, kx, kt = jax.random.split(key, 3)
    params = init_params(kp, seq=S, width=D, heads=H, layers=L, proj_dim=P)

    prompts = 0.02 * jax.random.normal(kx, (B, S, D), jnp.float32)
    # token ids; the max token (EOT) sits at a different position per example
    tokenized_prompts = jax.random.randint(kt, (B, S), 1, 100).astype(jnp.int32)
    for b, pos_i in enumerate([5, 3, 7, 0]):
        tokenized_prompts = tokenized_prompts.at[b, pos_i].set(49407)

    out = text_encoder_forward(prompts, tokenized_prompts, params, num_heads=H)
    out = jax.block_until_ready(out)

    ref = ref_forward(prompts, tokenized_prompts, params, num_heads=H)
    assert out.shape == (B, P)
    # Kernel uses bf16 matmul operands with f32 accumulation (vs f32 reference),
    # so tolerance is set accordingly.
    assert jnp.allclose(out, ref, atol=2e-2, rtol=2e-2), "mismatch vs reference"

    print("KERNEL_OK")
</pallas_src>

<mosaic_0001>
module attributes {stable_mosaic.version = 11 : i64} {
  func.func @encoder_kernel(%arg0: i32, %arg1: i32, %arg2: memref<4x8x32xf32, #tpu.memory_space<vmem>>, %arg3: memref<8x32xf32, #tpu.memory_space<vmem>>, %arg4: memref<1x1x32xf32, #tpu.memory_space<vmem>>, %arg5: memref<1x1x32xf32, #tpu.memory_space<vmem>>, %arg6: memref<1x32x96xbf16, #tpu.memory_space<vmem>>, %arg7: memref<1x1x96xf32, #tpu.memory_space<vmem>>, %arg8: memref<1x32x32xbf16, #tpu.memory_space<vmem>>, %arg9: memref<1x1x32xf32, #tpu.memory_space<vmem>>, %arg10: memref<1x1x32xf32, #tpu.memory_space<vmem>>, %arg11: memref<1x1x32xf32, #tpu.memory_space<vmem>>, %arg12: memref<1x32x128xbf16, #tpu.memory_space<vmem>>, %arg13: memref<1x1x128xf32, #tpu.memory_space<vmem>>, %arg14: memref<1x128x32xbf16, #tpu.memory_space<vmem>>, %arg15: memref<1x1x32xf32, #tpu.memory_space<vmem>>, %arg16: memref<4x8x32xf32, #tpu.memory_space<vmem>>, %arg17: memref<4x8x32xbf16, #tpu.memory_space<vmem>>, %arg18: memref<4x8x32xbf16, #tpu.memory_space<vmem>>, %arg19: memref<4x8x32xbf16, #tpu.memory_space<vmem>>, %arg20: memref<4x8x32xbf16, #tpu.memory_space<vmem>>, %arg21: memref<32x32xf32, #tpu.memory_space<vmem>>, %arg22: memref<4x8x32xf32, #tpu.memory_space<vmem>>) attributes {dimension_semantics = [#tpu.dimension_semantics<parallel>, #tpu.dimension_semantics<arbitrary>], iteration_bounds = array<i64: 1, 2>, scalar_prefetch = 0 : i64, scratch_operands = 6 : i64, tpu.core_type = #tpu.core_type<tc>, window_params = [{transform_indices = @transform_0, window_bounds = array<i64: 4, 8, 32>}, {pipeline_mode = #tpu.pipeline_mode<synchronous>, transform_indices = @transform_1, window_bounds = array<i64: 8, 32>}, {transform_indices = @transform_2, window_bounds = array<i64: 1, 1, 32>}, {transform_indices = @transform_3, window_bounds = array<i64: 1, 1, 32>}, {transform_indices = @transform_4, window_bounds = array<i64: 1, 32, 96>}, {transform_indices = @transform_5, window_bounds = array<i64: 1, 1, 96>}, {transform_indices = @transform_6, window_bounds = array<i64: 1, 32, 32>}, {transform_indices = @transform_7, window_bounds = array<i64: 1, 1, 32>}, {transform_indices = @transform_8, window_bounds = array<i64: 1, 1, 32>}, {transform_indices = @transform_9, window_bounds = array<i64: 1, 1, 32>}, {transform_indices = @transform_10, window_bounds = array<i64: 1, 32, 128>}, {transform_indices = @transform_11, window_bounds = array<i64: 1, 1, 128>}, {transform_indices = @transform_12, window_bounds = array<i64: 1, 128, 32>}, {transform_indices = @transform_13, window_bounds = array<i64: 1, 1, 32>}, {transform_indices = @transform_14, window_bounds = array<i64: 4, 8, 32>}]} {
    %c0_i32 = arith.constant 0 : i32
    %0 = arith.cmpi eq, %arg1, %c0_i32 : i32
    %1 = arith.extui %0 : i1 to i32
    %c0_i32_0 = arith.constant 0 : i32
    %2 = arith.cmpi ne, %1, %c0_i32_0 : i32
    scf.if %2 {
      %c0_102 = arith.constant 0 : index
      %c0_103 = arith.constant 0 : index
      %c0_104 = arith.constant 0 : index
      %148 = vector.load %arg2[%c0_102, %c0_103, %c0_104] : memref<4x8x32xf32, #tpu.memory_space<vmem>>, vector<4x8x32xf32>
      %c0_105 = arith.constant 0 : index
      %c0_106 = arith.constant 0 : index
      %149 = vector.load %arg3[%c0_105, %c0_106] : memref<8x32xf32, #tpu.memory_space<vmem>>, vector<8x32xf32>
      %150 = vector.shape_cast %149 : vector<8x32xf32> to vector<1x8x32xf32>
      %151 = vector.broadcast %150 : vector<1x8x32xf32> to vector<4x8x32xf32>
      %152 = arith.addf %148, %151 : vector<4x8x32xf32>
      %c0_107 = arith.constant 0 : index
      %c0_108 = arith.constant 0 : index
      %c0_109 = arith.constant 0 : index
      %153 = vector.load %arg22[%c0_107, %c0_108, %c0_109] : memref<4x8x32xf32, #tpu.memory_space<vmem>>, vector<4x8x32xf32>
      tpu.vector_store %arg22[%c0_107, %c0_108, %c0_109], %152 {strides = array<i32>} : memref<4x8x32xf32, #tpu.memory_space<vmem>>, vector<4x8x32xf32>,
    } else {
    }
    %c0 = arith.constant 0 : index
    %c0_1 = arith.constant 0 : index
    %c0_2 = arith.constant 0 : index
    %3 = vector.load %arg22[%c0, %c0_1, %c0_2] : memref<4x8x32xf32, #tpu.memory_space<vmem>>, vector<4x8x32xf32>
    %4 = vector.shape_cast %3 : vector<4x8x32xf32> to vector<32x32xf32>
    %c0_3 = arith.constant 0 : index
    %c0_4 = arith.constant 0 : index
    %c0_5 = arith.constant 0 : index
    %5 = vector.load %arg4[%c0_3, %c0_4, %c0_5] : memref<1x1x32xf32, #tpu.memory_space<vmem>>, vector<1x1x32xf32>
    %6 = vector.shape_cast %5 : vector<1x1x32xf32> to vector<32xf32>
    %c0_6 = arith.constant 0 : index
    %c0_7 = arith.constant 0 : index
    %c0_8 = arith.constant 0 : index
    %7 = vector.load %arg5[%c0_6, %c0_7, %c0_8] : memref<1x1x32xf32, #tpu.memory_space<vmem>>, vector<1x1x32xf32>
    %8 = vector.shape_cast %7 : vector<1x1x32xf32> to vector<32xf32>
    %cst = arith.constant dense<0.000000e+00> : vector<32xf32>
    %9 = vector.multi_reduction <add>, %4, %cst [1] : vector<32x32xf32> to vector<32xf32>
    %10 = vector.shape_cast %9 : vector<32xf32> to vector<32x1xf32>
    %cst_9 = arith.constant 3.200000e+01 : f32
    %11 = vector.broadcast %cst_9 : f32 to vector<32x1xf32>
    %12 = arith.divf %10, %11 : vector<32x1xf32>
    %13 = vector.broadcast %12 : vector<32x1xf32> to vector<32x32xf32>
    %14 = arith.subf %4, %13 : vector<32x32xf32>
    %15 = arith.mulf %14, %14 : vector<32x32xf32>
    %cst_10 = arith.constant dense<0.000000e+00> : vector<32xf32>
    %16 = vector.multi_reduction <add>, %15, %cst_10 [1] : vector<32x32xf32> to vector<32xf32>
    %17 = vector.shape_cast %16 : vector<32xf32> to vector<32x1xf32>
    %cst_11 = arith.constant 3.200000e+01 : f32
    %18 = vector.broadcast %cst_11 : f32 to vector<32x1xf32>
    %19 = arith.divf %17, %18 : vector<32x1xf32>
    %20 = vector.broadcast %12 : vector<32x1xf32> to vector<32x32xf32>
    %21 = arith.subf %4, %20 : vector<32x32xf32>
    %cst_12 = arith.constant 9.99999974E-6 : f32
    %22 = vector.broadcast %cst_12 : f32 to vector<32x1xf32>
    %23 = arith.addf %19, %22 : vector<32x1xf32>
    %24 = math.rsqrt %23 : vector<32x1xf32>
    %25 = vector.broadcast %24 : vector<32x1xf32> to vector<32x32xf32>
    %26 = arith.mulf %21, %25 : vector<32x32xf32>
    %27 = vector.shape_cast %6 : vector<32xf32> to vector<1x32xf32>
    %28 = vector.broadcast %27 : vector<1x32xf32> to vector<32x32xf32>
    %29 = arith.mulf %26, %28 : vector<32x32xf32>
    %30 = vector.shape_cast %8 : vector<32xf32> to vector<1x32xf32>
    %31 = vector.broadcast %30 : vector<1x32xf32> to vector<32x32xf32>
    %32 = arith.addf %29, %31 : vector<32x32xf32>
    %33 = arith.truncf %32 : vector<32x32xf32> to vector<32x32xbf16>
    %c0_13 = arith.constant 0 : index
    %c0_14 = arith.constant 0 : index
    %c0_15 = arith.constant 0 : index
    %34 = vector.load %arg6[%c0_13, %c0_14, %c0_15] : memref<1x32x96xbf16, #tpu.memory_space<vmem>>, vector<1x32x96xbf16>
    %35 = vector.shape_cast %34 : vector<1x32x96xbf16> to vector<32x96xbf16>
    %cst_16 = arith.constant dense<0.000000e+00> : vector<32x96xf32>
    %36 = tpu.matmul %33, %35, %cst_16 {dimension_numbers = #tpu.dot_dimension_numbers<[1], [0], [0], [1], [0, 0, 1, 1], [], []>} : vector<32x32xbf16>, vector<32x96xbf16>, vector<32x96xf32> -> vector<32x96xf32>
    %c0_17 = arith.constant 0 : index
    %c0_18 = arith.constant 0 : index
    %c0_19 = arith.constant 0 : index
    %37 = vector.load %arg7[%c0_17, %c0_18, %c0_19] : memref<1x1x96xf32, #tpu.memory_space<vmem>>, vector<1x1x96xf32>
    %38 = vector.shape_cast %37 : vector<1x1x96xf32> to vector<96xf32>
    %39 = vector.shape_cast %38 : vector<96xf32> to vector<1x96xf32>
    %40 = vector.broadcast %39 : vector<1x96xf32> to vector<32x96xf32>
    %41 = arith.addf %36, %40 : vector<32x96xf32>
    %42 = vector.extract_strided_slice %41 {offsets = [0, 0], sizes = [32, 32], strides = [1, 1]} : vector<32x96xf32> to vector<32x32xf32>
    %cst_20 = arith.constant 0.353553385 : f32
    %43 = vector.broadcast %cst_20 : f32 to vector<32x32xf32>
    %44 = arith.mulf %42, %43 : vector<32x32xf32>
    %45 = arith.truncf %44 : vector<32x32xf32> to vector<32x32xbf16>
    %46 = vector.shape_cast %45 : vector<32x32xbf16> to vector<4x8x32xbf16>
    %c0_21 = arith.constant 0 : index
    %c0_22 = arith.constant 0 : index
    %c0_23 = arith.constant 0 : index
    %47 = vector.load %arg17[%c0_21, %c0_22, %c0_23] : memref<4x8x32xbf16, #tpu.memory_space<vmem>>, vector<4x8x32xbf16>
    tpu.vector_store %arg17[%c0_21, %c0_22, %c0_23], %46 {strides = array<i32>} : memref<4x8x32xbf16, #tpu.memory_space<vmem>>, vector<4x8x32xbf16>,
    %48 = vector.extract_strided_slice %41 {offsets = [0, 32], sizes = [32, 32], strides = [1, 1]} : vector<32x96xf32> to vector<32x32xf32>
    %49 = arith.truncf %48 : vector<32x32xf32> to vector<32x32xbf16>
    %50 = vector.shape_cast %49 : vector<32x32xbf16> to vector<4x8x32xbf16>
    %c0_24 = arith.constant 0 : index
    %c0_25 = arith.constant 0 : index
    %c0_26 = arith.constant 0 : index
    %51 = vector.load %arg18[%c0_24, %c0_25, %c0_26] : memref<4x8x32xbf16, #tpu.memory_space<vmem>>, vector<4x8x32xbf16>
    tpu.vector_store %arg18[%c0_24, %c0_25, %c0_26], %50 {strides = array<i32>} : memref<4x8x32xbf16, #tpu.memory_space<vmem>>, vector<4x8x32xbf16>,
    %52 = vector.extract_strided_slice %41 {offsets = [0, 64], sizes = [32, 32], strides = [1, 1]} : vector<32x96xf32> to vector<32x32xf32>
    %53 = arith.truncf %52 : vector<32x32xf32> to vector<32x32xbf16>
    %54 = vector.shape_cast %53 : vector<32x32xbf16> to vector<4x8x32xbf16>
    %c0_27 = arith.constant 0 : index
    %c0_28 = arith.constant 0 : index
    %c0_29 = arith.constant 0 : index
    %55 = vector.load %arg19[%c0_27, %c0_28, %c0_29] : memref<4x8x32xbf16, #tpu.memory_space<vmem>>, vector<4x8x32xbf16>
    tpu.vector_store %arg19[%c0_27, %c0_28, %c0_29], %54 {strides = array<i32>} : memref<4x8x32xbf16, #tpu.memory_space<vmem>>, vector<4x8x32xbf16>,
    %56 = tpu.iota {dimensions = array<i32: 0>} : vector<8x8xi32>
    %57 = tpu.iota {dimensions = array<i32: 1>} : vector<8x8xi32>
    %58 = arith.cmpi sgt, %57, %56 : vector<8x8xi32>
    %cst_30 = arith.constant -1.000000e+30 : f32
    %cst_31 = arith.constant 0.000000e+00 : f32
    %59 = vector.broadcast %cst_30 : f32 to vector<8x8xf32>
    %60 = vector.broadcast %cst_31 : f32 to vector<8x8xf32>
    %61 = arith.select %58, %59, %60 : vector<8x8xi1>, vector<8x8xf32>
    %c0_i32_32 = arith.constant 0 : i32
    %c4_i32 = arith.constant 4 : i32
    %62 = arith.addi %c0_i32_32, %c4_i32 : i32
    %c1_i32 = arith.constant 1 : i32
    scf.for %arg23 = %c0_i32_32 to %62 step %c1_i32  : i32 {
      %c1_i32_102 = arith.constant 1 : i32
      %148 = arith.muli %arg23, %c1_i32_102 : i32
      %c0_i32_103 = arith.constant 0 : i32
      %149 = arith.addi %c0_i32_103, %148 : i32
      %150 = arith.index_cast %149 : i32 to index
      %c0_104 = arith.constant 0 : index
      %c0_105 = arith.constant 0 : index
      %151 = vector.load %arg17[%150, %c0_104, %c0_105] : memref<4x8x32xbf16, #tpu.memory_space<vmem>>, vector<1x8x32xbf16>
      %152 = vector.shape_cast %151 : vector<1x8x32xbf16> to vector<8x32xbf16>
      %153 = arith.index_cast %149 : i32 to index
      %c0_106 = arith.constant 0 : index
      %c0_107 = arith.constant 0 : index
      %154 = vector.load %arg18[%153, %c0_106, %c0_107] : memref<4x8x32xbf16, #tpu.memory_space<vmem>>, vector<1x8x32xbf16>
      %155 = vector.shape_cast %154 : vector<1x8x32xbf16> to vector<8x32xbf16>
      %156 = arith.index_cast %149 : i32 to index
      %c0_108 = arith.constant 0 : index
      %c0_109 = arith.constant 0 : index
      %157 = vector.load %arg19[%156, %c0_108, %c0_109] : memref<4x8x32xbf16, #tpu.memory_space<vmem>>, vector<1x8x32xbf16>
      %158 = vector.shape_cast %157 : vector<1x8x32xbf16> to vector<8x32xbf16>
      %159 = vector.extract_strided_slice %152 {offsets = [0, 0], sizes = [8, 8], strides = [1, 1]} : vector<8x32xbf16> to vector<8x8xbf16>
      %160 = vector.extract_strided_slice %155 {offsets = [0, 0], sizes = [8, 8], strides = [1, 1]} : vector<8x32xbf16> to vector<8x8xbf16>
      %cst_110 = arith.constant dense<0.000000e+00> : vector<8x8xf32>
      %161 = tpu.matmul %159, %160, %cst_110 {dimension_numbers = #tpu.dot_dimension_numbers<[1], [1], [0], [0], [0, 0, 1, 0], [], []>} : vector<8x8xbf16>, vector<8x8xbf16>, vector<8x8xf32> -> vector<8x8xf32>
      %162 = arith.addf %161, %61 : vector<8x8xf32>
      %cst_111 = arith.constant dense<0xFF800000> : vector<8xf32>
      %163 = vector.multi_reduction <maximumf>, %162, %cst_111 [1] : vector<8x8xf32> to vector<8xf32>
      %164 = vector.shape_cast %163 : vector<8xf32> to vector<8x1xf32>
      %165 = vector.broadcast %164 : vector<8x1xf32> to vector<8x8xf32>
      %166 = arith.subf %162, %165 : vector<8x8xf32>
      %167 = math.exp %166 : vector<8x8xf32>
      %cst_112 = arith.constant dense<0.000000e+00> : vector<8xf32>
      %168 = vector.multi_reduction <add>, %167, %cst_112 [1] : vector<8x8xf32> to vector<8xf32>
      %169 = vector.shape_cast %168 : vector<8xf32> to vector<8x1xf32>
      %170 = tpu.reciprocal %169 {approx = true} : vector<8x1xf32> -> vector<8x1xf32>
      %171 = vector.broadcast %170 : vector<8x1xf32> to vector<8x8xf32>
      %172 = arith.mulf %167, %171 : vector<8x8xf32>
      %173 = arith.truncf %172 : vector<8x8xf32> to vector<8x8xbf16>
      %174 = vector.extract_strided_slice %158 {offsets = [0, 0], sizes = [8, 8], strides = [1, 1]} : vector<8x32xbf16> to vector<8x8xbf16>
      %cst_113 = arith.constant dense<0.000000e+00> : vector<8x8xf32>
      %175 = tpu.matmul %173, %174, %cst_113 {dimension_numbers = #tpu.dot_dimension_numbers<[1], [0], [0], [1], [0, 0, 1, 1], [], []>} : vector<8x8xbf16>, vector<8x8xbf16>, vector<8x8xf32> -> vector<8x8xf32>
      %176 = arith.truncf %175 : vector<8x8xf32> to vector<8x8xbf16>
      %177 = vector.extract_strided_slice %152 {offsets = [0, 8], sizes = [8, 8], strides = [1, 1]} : vector<8x32xbf16> to vector<8x8xbf16>
      %178 = vector.extract_strided_slice %155 {offsets = [0, 8], sizes = [8, 8], strides = [1, 1]} : vector<8x32xbf16> to vector<8x8xbf16>
      %cst_114 = arith.constant dense<0.000000e+00> : vector<8x8xf32>
      %179 = tpu.matmul %177, %178, %cst_114 {dimension_numbers = #tpu.dot_dimension_numbers<[1], [1], [0], [0], [0, 0, 1, 0], [], []>} : vector<8x8xbf16>, vector<8x8xbf16>, vector<8x8xf32> -> vector<8x8xf32>
      %180 = arith.addf %179, %61 : vector<8x8xf32>
      %cst_115 = arith.constant dense<0xFF800000> : vector<8xf32>
      %181 = vector.multi_reduction <maximumf>, %180, %cst_115 [1] : vector<8x8xf32> to vector<8xf32>
      %182 = vector.shape_cast %181 : vector<8xf32> to vector<8x1xf32>
      %183 = vector.broadcast %182 : vector<8x1xf32> to vector<8x8xf32>
      %184 = arith.subf %180, %183 : vector<8x8xf32>
      %185 = math.exp %184 : vector<8x8xf32>
      %cst_116 = arith.constant dense<0.000000e+00> : vector<8xf32>
      %186 = vector.multi_reduction <add>, %185, %cst_116 [1] : vector<8x8xf32> to vector<8xf32>
      %187 = vector.shape_cast %186 : vector<8xf32> to vector<8x1xf32>
      %188 = tpu.reciprocal %187 {approx = true} : vector<8x1xf32> -> vector<8x1xf32>
      %189 = vector.broadcast %188 : vector<8x1xf32> to vector<8x8xf32>
      %190 = arith.mulf %185, %189 : vector<8x8xf32>
      %191 = arith.truncf %190 : vector<8x8xf32> to vector<8x8xbf16>
      %192 = vector.extract_strided_slice %158 {offsets = [0, 8], sizes = [8, 8], strides = [1, 1]} : vector<8x32xbf16> to vector<8x8xbf16>
      %cst_117 = arith.constant dense<0.000000e+00> : vector<8x8xf32>
      %193 = tpu.matmul %191, %192, %cst_117 {dimension_numbers = #tpu.dot_dimension_numbers<[1], [0], [0], [1], [0, 0, 1, 1], [], []>} : vector<8x8xbf16>, vector<8x8xbf16>, vector<8x8xf32> -> vector<8x8xf32>
      %194 = arith.truncf %193 : vector<8x8xf32> to vector<8x8xbf16>
      %195 = vector.extract_strided_slice %152 {offsets = [0, 16], sizes = [8, 8], strides = [1, 1]} : vector<8x32xbf16> to vector<8x8xbf16>
      %196 = vector.extract_strided_slice %155 {offsets = [0, 16], sizes = [8, 8], strides = [1, 1]} : vector<8x32xbf16> to vector<8x8xbf16>
      %cst_118 = arith.constant dense<0.000000e+00> : vector<8x8xf32>
      %197 = tpu.matmul %195, %196, %cst_118 {dimension_numbers = #tpu.dot_dimension_numbers<[1], [1], [0], [0], [0, 0, 1, 0], [], []>} : vector<8x8xbf16>, vector<8x8xbf16>, vector<8x8xf32> -> vector<8x8xf32>
      %198 = arith.addf %197, %61 : vector<8x8xf32>
      %cst_119 = arith.constant dense<0xFF800000> : vector<8xf32>
      %199 = vector.multi_reduction <maximumf>, %198, %cst_119 [1] : vector<8x8xf32> to vector<8xf32>
      %200 = vector.shape_cast %199 : vector<8xf32> to vector<8x1xf32>
      %201 = vector.broadcast %200 : vector<8x1xf32> to vector<8x8xf32>
      %202 = arith.subf %198, %201 : vector<8x8xf32>
      %203 = math.exp %202 : vector<8x8xf32>
      %cst_120 = arith.constant dense<0.000000e+00> : vector<8xf32>
      %204 = vector.multi_reduction <add>, %203, %cst_120 [1] : vector<8x8xf32> to vector<8xf32>
      %205 = vector.shape_cast %204 : vector<8xf32> to vector<8x1xf32>
      %206 = tpu.reciprocal %205 {approx = true} : vector<8x1xf32> -> vector<8x1xf32>
      %207 = vector.broadcast %206 : vector<8x1xf32> to vector<8x8xf32>
      %208 = arith.mulf %203, %207 : vector<8x8xf32>
      %209 = arith.truncf %208 : vector<8x8xf32> to vector<8x8xbf16>
      %210 = vector.extract_strided_slice %158 {offsets = [0, 16], sizes = [8, 8], strides = [1, 1]} : vector<8x32xbf16> to vector<8x8xbf16>
      %cst_121 = arith.constant dense<0.000000e+00> : vector<8x8xf32>
      %211 = tpu.matmul %209, %210, %cst_121 {dimension_numbers = #tpu.dot_dimension_numbers<[1], [0], [0], [1], [0, 0, 1, 1], [], []>} : vector<8x8xbf16>, vector<8x8xbf16>, vector<8x8xf32> -> vector<8x8xf32>
      %212 = arith.truncf %211 : vector<8x8xf32> to vector<8x8xbf16>
      %213 = vector.extract_strided_slice %152 {offsets = [0, 24], sizes = [8, 8], strides = [1, 1]} : vector<8x32xbf16> to vector<8x8xbf16>
      %214 = vector.extract_strided_slice %155 {offsets = [0, 24], sizes = [8, 8], strides = [1, 1]} : vector<8x32xbf16> to vector<8x8xbf16>
      %cst_122 = arith.constant dense<0.000000e+00> : vector<8x8xf32>
      %215 = tpu.matmul %213, %214, %cst_122 {dimension_numbers = #tpu.dot_dimension_numbers<[1], [1], [0], [0], [0, 0, 1, 0], [], []>} : vector<8x8xbf16>, vector<8x8xbf16>, vector<8x8xf32> -> vector<8x8xf32>
      %216 = arith.addf %215, %61 : vector<8x8xf32>
      %cst_123 = arith.constant dense<0xFF800000> : vector<8xf32>
      %217 = vector.multi_reduction <maximumf>, %216, %cst_123 [1] : vector<8x8xf32> to vector<8xf32>
      %218 = vector.shape_cast %217 : vector<8xf32> to vector<8x1xf32>
      %219 = vector.broadcast %218 : vector<8x1xf32> to vector<8x8xf32>
      %220 = arith.subf %216, %219 : vector<8x8xf32>
      %221 = math.exp %220 : vector<8x8xf32>
      %cst_124 = arith.constant dense<0.000000e+00> : vector<8xf32>
      %222 = vector.multi_reduction <add>, %221, %cst_124 [1] : vector<8x8xf32> to vector<8xf32>
      %223 = vector.shape_cast %222 : vector<8xf32> to vector<8x1xf32>
      %224 = tpu.reciprocal %223 {approx = true} : vector<8x1xf32> -> vector<8x1xf32>
      %225 = vector.broadcast %224 : vector<8x1xf32> to vector<8x8xf32>
      %226 = arith.mulf %221, %225 : vector<8x8xf32>
      %227 = arith.truncf %226 : vector<8x8xf32> to vector<8x8xbf16>
      %228 = vector.extract_strided_slice %158 {offsets = [0, 24], sizes = [8, 8], strides = [1, 1]} : vector<8x32xbf16> to vector<8x8xbf16>
      %cst_125 = arith.constant dense<0.000000e+00> : vector<8x8xf32>
      %229 = tpu.matmul %227, %228, %cst_125 {dimension_numbers = #tpu.dot_dimension_numbers<[1], [0], [0], [1], [0, 0, 1, 1], [], []>} : vector<8x8xbf16>, vector<8x8xbf16>, vector<8x8xf32> -> vector<8x8xf32>
      %230 = arith.truncf %229 : vector<8x8xf32> to vector<8x8xbf16>
      %231 = tpu.concatenate %176, %194, %212, %230 in 1 : vector<8x8xbf16>, vector<8x8xbf16>, vector<8x8xbf16>, vector<8x8xbf16> -> vector<8x32xbf16>
      %232 = arith.index_cast %149 : i32 to index
      %c0_126 = arith.constant 0 : index
      %c0_127 = arith.constant 0 : index
      %233 = vector.load %arg20[%232, %c0_126, %c0_127] : memref<4x8x32xbf16, #tpu.memory_space<vmem>>, vector<1x8x32xbf16>
      %234 = vector.shape_cast %233 : vector<1x8x32xbf16> to vector<8x32xbf16>
      %235 = vector.shape_cast %231 : vector<8x32xbf16> to vector<1x8x32xbf16>
      tpu.vector_store %arg20[%232, %c0_126, %c0_127], %235 {strides = array<i32>} : memref<4x8x32xbf16, #tpu.memory_space<vmem>>, vector<1x8x32xbf16>,
    }
    %c4_i32_33 = arith.constant 4 : i32
    %c0_34 = arith.constant 0 : index
    %c0_35 = arith.constant 0 : index
    %c0_36 = arith.constant 0 : index
    %63 = vector.load %arg20[%c0_34, %c0_35, %c0_36] : memref<4x8x32xbf16, #tpu.memory_space<vmem>>, vector<4x8x32xbf16>
    %64 = vector.shape_cast %63 : vector<4x8x32xbf16> to vector<32x32xbf16>
    %c0_37 = arith.constant 0 : index
    %c0_38 = arith.constant 0 : index
    %c0_39 = arith.constant 0 : index
    %65 = vector.load %arg8[%c0_37, %c0_38, %c0_39] : memref<1x32x32xbf16, #tpu.memory_space<vmem>>, vector<1x32x32xbf16>
    %66 = vector.shape_cast %65 : vector<1x32x32xbf16> to vector<32x32xbf16>
    %cst_40 = arith.constant dense<0.000000e+00> : vector<32x32xf32>
    %67 = tpu.matmul %64, %66, %cst_40 {dimension_numbers = #tpu.dot_dimension_numbers<[1], [0], [0], [1], [0, 0, 1, 1], [], []>} : vector<32x32xbf16>, vector<32x32xbf16>, vector<32x32xf32> -> vector<32x32xf32>
    %c0_41 = arith.constant 0 : index
    %c0_42 = arith.constant 0 : index
    %c0_43 = arith.constant 0 : index
    %68 = vector.load %arg9[%c0_41, %c0_42, %c0_43] : memref<1x1x32xf32, #tpu.memory_space<vmem>>, vector<1x1x32xf32>
    %69 = vector.shape_cast %68 : vector<1x1x32xf32> to vector<32xf32>
    %70 = vector.shape_cast %69 : vector<32xf32> to vector<1x32xf32>
    %71 = vector.broadcast %70 : vector<1x32xf32> to vector<32x32xf32>
    %72 = arith.addf %67, %71 : vector<32x32xf32>
    %c0_44 = arith.constant 0 : index
    %c0_45 = arith.constant 0 : index
    %c0_46 = arith.constant 0 : index
    %73 = vector.load %arg22[%c0_44, %c0_45, %c0_46] : memref<4x8x32xf32, #tpu.memory_space<vmem>>, vector<4x8x32xf32>
    %74 = vector.shape_cast %72 : vector<32x32xf32> to vector<4x8x32xf32>
    %75 = arith.addf %73, %74 : vector<4x8x32xf32>
    %c0_47 = arith.constant 0 : index
    %c0_48 = arith.constant 0 : index
    %c0_49 = arith.constant 0 : index
    %76 = vector.load %arg22[%c0_47, %c0_48, %c0_49] : memref<4x8x32xf32, #tpu.memory_space<vmem>>, vector<4x8x32xf32>
    tpu.vector_store %arg22[%c0_47, %c0_48, %c0_49], %75 {strides = array<i32>} : memref<4x8x32xf32, #tpu.memory_space<vmem>>, vector<4x8x32xf32>,
    %c0_50 = arith.constant 0 : index
    %c0_51 = arith.constant 0 : index
    %c0_52 = arith.constant 0 : index
    %77 = vector.load %arg22[%c0_50, %c0_51, %c0_52] : memref<4x8x32xf32, #tpu.memory_space<vmem>>, vector<4x8x32xf32>
    %78 = vector.shape_cast %77 : vector<4x8x32xf32> to vector<32x32xf32>
    %c0_53 = arith.constant 0 : index
    %c0_54 = arith.constant 0 : index
    %c0_55 = arith.constant 0 : index
    %79 = vector.load %arg10[%c0_53, %c0_54, %c0_55] : memref<1x1x32xf32, #tpu.memory_space<vmem>>, vector<1x1x32xf32>
    %80 = vector.shape_cast %79 : vector<1x1x32xf32> to vector<32xf32>
    %c0_56 = arith.constant 0 : index
    %c0_57 = arith.constant 0 : index
    %c0_58 = arith.constant 0 : index
    %81 = vector.load %arg11[%c0_56, %c0_57, %c0_58] : memref<1x1x32xf32, #tpu.memory_space<vmem>>, vector<1x1x32xf32>
    %82 = vector.shape_cast %81 : vector<1x1x32xf32> to vector<32xf32>
    %cst_59 = arith.constant dense<0.000000e+00> : vector<32xf32>
    %83 = vector.multi_reduction <add>, %78, %cst_59 [1] : vector<32x32xf32> to vector<32xf32>
    %84 = vector.shape_cast %83 : vector<32xf32> to vector<32x1xf32>
    %cst_60 = arith.constant 3.200000e+01 : f32
    %85 = vector.broadcast %cst_60 : f32 to vector<32x1xf32>
    %86 = arith.divf %84, %85 : vector<32x1xf32>
    %87 = vector.broadcast %86 : vector<32x1xf32> to vector<32x32xf32>
    %88 = arith.subf %78, %87 : vector<32x32xf32>
    %89 = arith.mulf %88, %88 : vector<32x32xf32>
    %cst_61 = arith.constant dense<0.000000e+00> : vector<32xf32>
    %90 = vector.multi_reduction <add>, %89, %cst_61 [1] : vector<32x32xf32> to vector<32xf32>
    %91 = vector.shape_cast %90 : vector<32xf32> to vector<32x1xf32>
    %cst_62 = arith.constant 3.200000e+01 : f32
    %92 = vector.broadcast %cst_62 : f32 to vector<32x1xf32>
    %93 = arith.divf %91, %92 : vector<32x1xf32>
    %94 = vector.broadcast %86 : vector<32x1xf32> to vector<32x32xf32>
    %95 = arith.subf %78, %94 : vector<32x32xf32>
    %cst_63 = arith.constant 9.99999974E-6 : f32
    %96 = vector.broadcast %cst_63 : f32 to vector<32x1xf32>
    %97 = arith.addf %93, %96 : vector<32x1xf32>
    %98 = math.rsqrt %97 : vector<32x1xf32>
    %99 = vector.broadcast %98 : vector<32x1xf32> to vector<32x32xf32>
    %100 = arith.mulf %95, %99 : vector<32x32xf32>
    %101 = vector.shape_cast %80 : vector<32xf32> to vector<1x32xf32>
    %102 = vector.broadcast %101 : vector<1x32xf32> to vector<32x32xf32>
    %103 = arith.mulf %100, %102 : vector<32x32xf32>
    %104 = vector.shape_cast %82 : vector<32xf32> to vector<1x32xf32>
    %105 = vector.broadcast %104 : vector<1x32xf32> to vector<32x32xf32>
    %106 = arith.addf %103, %105 : vector<32x32xf32>
    %107 = arith.truncf %106 : vector<32x32xf32> to vector<32x32xbf16>
    %108 = vector.shape_cast %107 : vector<32x32xbf16> to vector<4x8x32xbf16>
    %c0_64 = arith.constant 0 : index
    %c0_65 = arith.constant 0 : index
    %c0_66 = arith.constant 0 : index
    %109 = vector.load %arg17[%c0_64, %c0_65, %c0_66] : memref<4x8x32xbf16, #tpu.memory_space<vmem>>, vector<4x8x32xbf16>
    tpu.vector_store %arg17[%c0_64, %c0_65, %c0_66], %108 {strides = array<i32>} : memref<4x8x32xbf16, #tpu.memory_space<vmem>>, vector<4x8x32xbf16>,
    %c0_67 = arith.constant 0 : index
    %c0_68 = arith.constant 0 : index
    %c0_69 = arith.constant 0 : index
    %110 = vector.load %arg15[%c0_67, %c0_68, %c0_69] : memref<1x1x32xf32, #tpu.memory_space<vmem>>, vector<1x1x32xf32>
    %111 = vector.shape_cast %110 : vector<1x1x32xf32> to vector<32xf32>
    %112 = vector.shape_cast %111 : vector<32xf32> to vector<1x32xf32>
    %113 = vector.broadcast %112 : vector<1x32xf32> to vector<32x32xf32>
    %c0_70 = arith.constant 0 : index
    %c0_71 = arith.constant 0 : index
    %114 = vector.load %arg21[%c0_70, %c0_71] : memref<32x32xf32, #tpu.memory_space<vmem>>, vector<32x32xf32>
    tpu.vector_store %arg21[%c0_70, %c0_71], %113 {strides = array<i32>} : memref<32x32xf32, #tpu.memory_space<vmem>>, vector<32x32xf32>,
    %c0_72 = arith.constant 0 : index
    %c0_73 = arith.constant 0 : index
    %c0_74 = arith.constant 0 : index
    %115 = vector.load %arg17[%c0_72, %c0_73, %c0_74] : memref<4x8x32xbf16, #tpu.memory_space<vmem>>, vector<4x8x32xbf16>
    %116 = vector.shape_cast %115 : vector<4x8x32xbf16> to vector<32x32xbf16>
    %c0_75 = arith.constant 0 : index
    %c0_76 = arith.constant 0 : index
    %c0_77 = arith.constant 0 : index
    %117 = vector.load %arg12[%c0_75, %c0_76, %c0_77] : memref<1x32x128xbf16, #tpu.memory_space<vmem>>, vector<1x32x128xbf16>
    %118 = vector.shape_cast %117 : vector<1x32x128xbf16> to vector<32x128xbf16>
    %cst_78 = arith.constant dense<0.000000e+00> : vector<32x128xf32>
    %119 = tpu.matmul %116, %118, %cst_78 {dimension_numbers = #tpu.dot_dimension_numbers<[1], [0], [0], [1], [0, 0, 1, 1], [], []>} : vector<32x32xbf16>, vector<32x128xbf16>, vector<32x128xf32> -> vector<32x128xf32>
    %c0_79 = arith.constant 0 : index
    %c0_80 = arith.constant 0 : index
    %c0_81 = arith.constant 0 : index
    %120 = vector.load %arg13[%c0_79, %c0_80, %c0_81] : memref<1x1x128xf32, #tpu.memory_space<vmem>>, vector<1x1x128xf32>
    %121 = vector.shape_cast %120 : vector<1x1x128xf32> to vector<128xf32>
    %122 = vector.shape_cast %121 : vector<128xf32> to vector<1x128xf32>
    %123 = vector.broadcast %122 : vector<1x128xf32> to vector<32x128xf32>
    %124 = arith.addf %119, %123 : vector<32x128xf32>
    %cst_82 = arith.constant 1.702000e+00 : f32
    %125 = vector.broadcast %cst_82 : f32 to vector<32x128xf32>
    %126 = arith.mulf %125, %124 : vector<32x128xf32>
    %127 = arith.negf %126 : vector<32x128xf32>
    %128 = math.exp %127 : vector<32x128xf32>
    %cst_83 = arith.constant 1.000000e+00 : f32
    %129 = vector.broadcast %cst_83 : f32 to vector<32x128xf32>
    %130 = arith.addf %129, %128 : vector<32x128xf32>
    %131 = arith.divf %129, %130 : vector<32x128xf32>
    %132 = arith.mulf %124, %131 : vector<32x128xf32>
    %c0_84 = arith.constant 0 : index
    %c0_85 = arith.constant 0 : index
    %133 = vector.load %arg21[%c0_84, %c0_85] : memref<32x32xf32, #tpu.memory_space<vmem>>, vector<32x32xf32>
    %134 = arith.truncf %132 : vector<32x128xf32> to vector<32x128xbf16>
    %c0_86 = arith.constant 0 : index
    %c0_87 = arith.constant 0 : index
    %c0_88 = arith.constant 0 : index
    %135 = vector.load %arg14[%c0_86, %c0_87, %c0_88] : memref<1x128x32xbf16, #tpu.memory_space<vmem>>, vector<1x128x32xbf16>
    %136 = vector.shape_cast %135 : vector<1x128x32xbf16> to vector<128x32xbf16>
    %cst_89 = arith.constant dense<0.000000e+00> : vector<32x32xf32>
    %137 = tpu.matmul %134, %136, %cst_89 {dimension_numbers = #tpu.dot_dimension_numbers<[1], [0], [0], [1], [0, 0, 1, 1], [], []>} : vector<32x128xbf16>, vector<128x32xbf16>, vector<32x32xf32> -> vector<32x32xf32>
    %138 = arith.addf %133, %137 : vector<32x32xf32>
    %c0_90 = arith.constant 0 : index
    %c0_91 = arith.constant 0 : index
    %139 = vector.load %arg21[%c0_90, %c0_91] : memref<32x32xf32, #tpu.memory_space<vmem>>, vector<32x32xf32>
    tpu.vector_store %arg21[%c0_90, %c0_91], %138 {strides = array<i32>} : memref<32x32xf32, #tpu.memory_space<vmem>>, vector<32x32xf32>,
    %c0_92 = arith.constant 0 : index
    %c0_93 = arith.constant 0 : index
    %c0_94 = arith.constant 0 : index
    %140 = vector.load %arg22[%c0_92, %c0_93, %c0_94] : memref<4x8x32xf32, #tpu.memory_space<vmem>>, vector<4x8x32xf32>
    %c0_95 = arith.constant 0 : index
    %c0_96 = arith.constant 0 : index
    %141 = vector.load %arg21[%c0_95, %c0_96] : memref<32x32xf32, #tpu.memory_space<vmem>>, vector<32x32xf32>
    %142 = vector.shape_cast %141 : vector<32x32xf32> to vector<4x8x32xf32>
    %143 = arith.addf %140, %142 : vector<4x8x32xf32>
    %c0_97 = arith.constant 0 : index
    %c0_98 = arith.constant 0 : index
    %c0_99 = arith.constant 0 : index
    %144 = vector.load %arg22[%c0_97, %c0_98, %c0_99] : memref<4x8x32xf32, #tpu.memory_space<vmem>>, vector<4x8x32xf32>
    tpu.vector_store %arg22[%c0_97, %c0_98, %c0_99], %143 {strides = array<i32>} : memref<4x8x32xf32, #tpu.memory_space<vmem>>, vector<4x8x32xf32>,
    %c1_i32_100 = arith.constant 1 : i32
    %145 = arith.cmpi eq, %arg1, %c1_i32_100 : i32
    %146 = arith.extui %145 : i1 to i32
    %c0_i32_101 = arith.constant 0 : i32
    %147 = arith.cmpi ne, %146, %c0_i32_101 : i32
    scf.if %147 {
      %c0_102 = arith.constant 0 : index
      %c0_103 = arith.constant 0 : index
      %c0_104 = arith.constant 0 : index
      %148 = vector.load %arg22[%c0_102, %c0_103, %c0_104] : memref<4x8x32xf32, #tpu.memory_space<vmem>>, vector<4x8x32xf32>
      %c0_105 = arith.constant 0 : index
      %c0_106 = arith.constant 0 : index
      %c0_107 = arith.constant 0 : index
      %149 = vector.load %arg16[%c0_105, %c0_106, %c0_107] : memref<4x8x32xf32, #tpu.memory_space<vmem>>, vector<4x8x32xf32>
      tpu.vector_store %arg16[%c0_105, %c0_106, %c0_107], %148 {strides = array<i32>} : memref<4x8x32xf32, #tpu.memory_space<vmem>>, vector<4x8x32xf32>,
    } else {
    }
    return
  }
  func.func @transform_0(%arg0: i32, %arg1: i32) -> (i32, i32, i32) {
    %c0_i32 = arith.constant 0 : i32
    %c0_i32_0 = arith.constant 0 : i32
    %c0_i32_1 = arith.constant 0 : i32
    return %arg0, %c0_i32, %c0_i32_0 : i32, i32, i32
  }
  func.func @transform_1(%arg0: i32, %arg1: i32) -> (i32, i32) {
    %c0_i32 = arith.constant 0 : i32
    %c0_i32_0 = arith.constant 0 : i32
    %c0_i32_1 = arith.constant 0 : i32
    return %c0_i32, %c0_i32_0 : i32, i32
  }
  func.func @transform_2(%arg0: i32, %arg1: i32) -> (i32, i32, i32) {
    %c0_i32 = arith.constant 0 : i32
    %c0_i32_0 = arith.constant 0 : i32
    %c0_i32_1 = arith.constant 0 : i32
    return %arg1, %c0_i32, %c0_i32_0 : i32, i32, i32
  }
  func.func @transform_3(%arg0: i32, %arg1: i32) -> (i32, i32, i32) {
    %c0_i32 = arith.constant 0 : i32
    %c0_i32_0 = arith.constant 0 : i32
    %c0_i32_1 = arith.constant 0 : i32
    return %arg1, %c0_i32, %c0_i32_0 : i32, i32, i32
  }
  func.func @transform_4(%arg0: i32, %arg1: i32) -> (i32, i32, i32) {
    %c0_i32 = arith.constant 0 : i32
    %c0_i32_0 = arith.constant 0 : i32
    %c0_i32_1 = arith.constant 0 : i32
    return %arg1, %c0_i32, %c0_i32_0 : i32, i32, i32
  }
  func.func @transform_5(%arg0: i32, %arg1: i32) -> (i32, i32, i32) {
    %c0_i32 = arith.constant 0 : i32
    %c0_i32_0 = arith.constant 0 : i32
    %c0_i32_1 = arith.constant 0 : i32
    return %arg1, %c0_i32, %c0_i32_0 : i32, i32, i32
  }
  func.func @transform_6(%arg0: i32, %arg1: i32) -> (i32, i32, i32) {
    %c0_i32 = arith.constant 0 : i32
    %c0_i32_0 = arith.constant 0 : i32
    %c0_i32_1 = arith.constant 0 : i32
    return %arg1, %c0_i32, %c0_i32_0 : i32, i32, i32
  }
  func.func @transform_7(%arg0: i32, %arg1: i32) -> (i32, i32, i32) {
    %c0_i32 = arith.constant 0 : i32
    %c0_i32_0 = arith.constant 0 : i32
    %c0_i32_1 = arith.constant 0 : i32
    return %arg1, %c0_i32, %c0_i32_0 : i32, i32, i32
  }
  func.func @transform_8(%arg0: i32, %arg1: i32) -> (i32, i32, i32) {
    %c0_i32 = arith.constant 0 : i32
    %c0_i32_0 = arith.constant 0 : i32
    %c0_i32_1 = arith.constant 0 : i32
    return %arg1, %c0_i32, %c0_i32_0 : i32, i32, i32
  }
  func.func @transform_9(%arg0: i32, %arg1: i32) -> (i32, i32, i32) {
    %c0_i32 = arith.constant 0 : i32
    %c0_i32_0 = arith.constant 0 : i32
    %c0_i32_1 = arith.constant 0 : i32
    return %arg1, %c0_i32, %c0_i32_0 : i32, i32, i32
  }
  func.func @transform_10(%arg0: i32, %arg1: i32) -> (i32, i32, i32) {
    %c0_i32 = arith.constant 0 : i32
    %c0_i32_0 = arith.constant 0 : i32
    %c0_i32_1 = arith.constant 0 : i32
    return %arg1, %c0_i32, %c0_i32_0 : i32, i32, i32
  }
  func.func @transform_11(%arg0: i32, %arg1: i32) -> (i32, i32, i32) {
    %c0_i32 = arith.constant 0 : i32
    %c0_i32_0 = arith.constant 0 : i32
    %c0_i32_1 = arith.constant 0 : i32
    return %arg1, %c0_i32, %c0_i32_0 : i32, i32, i32
  }
  func.func @transform_12(%arg0: i32, %arg1: i32) -> (i32, i32, i32) {
    %c0_i32 = arith.constant 0 : i32
    %c0_i32_0 = arith.constant 0 : i32
    %c0_i32_1 = arith.constant 0 : i32
    return %arg1, %c0_i32, %c0_i32_0 : i32, i32, i32
  }
  func.func @transform_13(%arg0: i32, %arg1: i32) -> (i32, i32, i32) {
    %c0_i32 = arith.constant 0 : i32
    %c0_i32_0 = arith.constant 0 : i32
    %c0_i32_1 = arith.constant 0 : i32
    return %arg1, %c0_i32, %c0_i32_0 : i32, i32, i32
  }
  func.func @transform_14(%arg0: i32, %arg1: i32) -> (i32, i32, i32) {
    %c0_i32 = arith.constant 0 : i32
    %c0_i32_0 = arith.constant 0 : i32
    %c0_i32_1 = arith.constant 0 : i32
    return %arg0, %c0_i32, %c0_i32_0 : i32, i32, i32
  }
}

</mosaic_0001>

<bundles_post_ra>
// kernel: tpu_custom_call.1
= control target key start
LH: loop header
LB: loop body
LE: loop exit
PB: predicated region body
PF: predicated region fallthrough
CT: control target
= control target key end

     0   :  { %s2623_s0 = inlined_call_operand.vmem [shape: f32[4,8,32], index: 0, kind: input, shape index: {}]   ;;  %s2624_s1 = inlined_call_operand.vmem [shape: f32[8,32], index: 1, kind: input, shape index: {}]   ;;  %s2625_s2 = inlined_call_operand.vmem [shape: f32[2,1,32], index: 2, kind: input, shape index: {}]   ;;  %s2626_s3 = inlined_call_operand.vmem [shape: f32[2,1,32], index: 3, kind: input, shape index: {}]   ;;  %s2627_s4 = inlined_call_operand.vmem [shape: bf16[2,32,96], index: 4, kind: input, shape index: {}]   ;;  %s2628_s5 = inlined_call_operand.vmem [shape: f32[2,1,96], index: 5, kind: input, shape index: {}]   ;;  %s2629_s6 = inlined_call_operand.vmem [shape: bf16[2,32,32], index: 6, kind: input, shape index: {}]   ;;  %s2630_s7 = inlined_call_operand.vmem [shape: f32[2,1,32], index: 7, kind: input, shape index: {}]   ;;  %s2631_s8 = inlined_call_operand.vmem [shape: f32[2,1,32], index: 8, kind: input, shape index: {}]   ;;  %s2632_s9 = inlined_call_operand.vmem [shape: f32[2,1,32], index: 9, kind: input, shape index: {}]   ;;  %s2633_s10 = inlined_call_operand.vmem [shape: bf16[2,32,128], index: 10, kind: input, shape index: {}]   ;;  %s2634_s11 = inlined_call_operand.vmem [shape: f32[2,1,128], index: 11, kind: input, shape index: {}]   ;;  %s2635_s12 = inlined_call_operand.vmem [shape: bf16[2,128,32], index: 12, kind: input, shape index: {}]   ;;  %s2636_s13 = inlined_call_operand.vmem [shape: f32[2,1,32], index: 13, kind: input, shape index: {}]   ;;  %s2637_s14 = inlined_call_operand.hbm [shape: f32[4,8,32], index: 14, kind: output, shape index: {}]  }
   0x1   :  { %2641 = sst [smem:[#allocation15_spill]] %s2626_s3 }
   0x2   :  { %2642 = sst [smem:[#allocation16_spill]] %s2627_s4 }
   0x3   :  { %2643 = sst [smem:[#allocation17_spill]] %s2629_s6 }
   0x4   :  { %2644 = sst [smem:[#allocation18_spill]] %s2637_s14 }
   0x5   :  { %19 = vsyncpa [#allocation9], 0  ;;  %s2252_s29 = smov 0   ;;  %s2254_s30 = smov 0  }
   0x6   :  { %s2256_s15 = smov 0  }
   0x7 LB: > { %2645 = sst [smem:[#allocation11_spill]] %s2154_s30  ;;  %s34_s17 = sadd.s32 1, %s2154_s30  ;;  %s2158_s15 = sphi %s2256_s15, %s25_s15   ;;  %s2154_s30 = sphi %s2254_s30, %s2663_s30   ;;  %s2150_s29 = sphi %s2252_s29, %s2662_s29  }
   0x8   : > { %2646 = sst [smem:[#allocation12_spill]] %s2158_s15  ;;  %p35_p0 = scmp.ge.s32.totalorder %s34_s17, 2 }
   0x9   : > { %p1850_p1 = scmp.ge.s32.totalorder %s2158_s15, 1  ;;  %p530_p2 = scmp.lt.s32.totalorder %s2158_s15, 3 }
   0xa   : > { %s2665_s17 = smov (%p35_p0, %s34_s17), 0 }
   0xb   : > { %2647 = sst [smem:[#allocation13_spill]] %s2665_s17  ;;  %p531_p3 = pnand %p1850_p1, %p530_p2 }
   0xd   : > { %534 = sbr.rel (%p531_p3) target bundleno = 2450 (0x992), region = 76 }
  0x12   : > { %p621_p4 = scmp.lt.s32.totalorder %s2150_s29, 1  ;;  %s2649_s4 = sld [smem:[#allocation16_spill]] }
  0x13   : > { %s2650_s6 = sld [smem:[#allocation17_spill]]  ;;  %p1859_p5 = scmp.ne.s32.totalorder %s2150_s29, 0 }
  0x14   : > { %s2275_s18 = scalar_select %p621_p4, %s2150_s29, 1 }
  0x16   : > { %s1959_s25 = sshll.u32 %s2275_s18, 4  ;;  %s645_s3 = scalar_lea.vmem %s2631_s8, %s2275_s18 }
  0x17   : > { %s648_s28 = scalar_lea.vmem %s2632_s9, %s2275_s18  ;;  %s664_s26 = scalar_lea.vmem %s2636_s13, %s2275_s18 }
  0x18   : > { %s2293_s16 = scalar_lea.vmem %s2649_s4, %s1959_s25  ;;  %s2315_s4 = scalar_lea.vmem %s2633_s10, %s1959_s25 }
  0x19   : > { %s2298_s14 = scalar_lea.vmem %s2650_s6, %s1959_s25  ;;  %s656_s6 = scalar_lea.vmem %s2634_s11, %s2275_s18 }
  0x1a   : > { %2651 = sst [smem:[#allocation14_spill]] %s2298_s14  ;;  %s1962_s14 = sshll.u32 %s2275_s18, 6 }
  0x1b   : > { %s2325_s22 = scalar_lea.vmem %s2635_s12, %s1962_s14  ;;  %670 = sbr.rel (%p1859_p5) target bundleno = 40 (0x28), region = 80 }
  0x20   : > { %v671_v0 = vld [vmem:[%s2623_s0] sm:$0xff]  ;;  %vm680_vm0 = vcmask 261120   ;;  %v672_v2 = vld [vmem:[%s2623_s0 + $0x8] sm:$0xff]  ;;  %v673_v5 = vld [vmem:[%s2623_s0 + $0x10] sm:$0xff] }
  0x21   : > { %v675_v1 = vld [vmem:[%s2624_s1] sm:$0xff]  ;;  %v674_v6 = vld [vmem:[%s2623_s0 + $0x18] sm:$0xff] }
  0x22   : > { %v676_v3 = vadd.f32 %v675_v1, %v671_v0  ;;  %v677_v4 = vadd.f32 %v675_v1, %v672_v2  ;;  %v678_v7 = vadd.f32 %v675_v1, %v673_v5  ;;  %v679_v8 = vadd.f32 %v675_v1, %v674_v6 }
  0x24   : > { %681 = vst.msk [vmem:[#allocation7] sm:$0xff] %vm680_vm0, %v676_v3 }
  0x25   : > { %682 = vst.msk [vmem:[#allocation7 + $0x8] sm:$0xff] %vm680_vm0, %v677_v4 }
  0x26   : > { %683 = vst.msk [vmem:[#allocation7 + $0x10] sm:$0xff] %vm680_vm0, %v678_v7 }
  0x27   : > { %684 = vst.msk [vmem:[#allocation7 + $0x18] sm:$0xff] %vm680_vm0, %v679_v8 }
  0x28 PF: > { %vm691_vm1 = vcmask 261120   ;;  %v2164_v17 = vmov 32.0   ;;  %v1964_v44 = vld [vmem:[%s2293_s16 + $0x8] sm:$0xff]  ;;  %v1963_v49 = vld [vmem:[%s2293_s16] sm:$0xff]  ;;  %s2652_s27 = scalar_lea.vmem %s2625_s2, %s2275_s18  ;;  %s2653_s20 = sld [smem:[#allocation15_spill]]  ;;  %vm856_vm15 = vcmask 257024  }
  0x29   : > { %2045 = vrcp.f32 %v2164_v17  ;;  %835 = vmatpush.bf16.msra.mxu0 %v1964_v44  ;;  %1981 = vmatpush.bf16.msra.mxu1 %v1964_v44  ;;  %s2655_s15 = scalar_lea.vmem %s2628_s5, %s2275_s18  ;;  %s2165_s21 = smov 96  }
  0x2a   : > { %s2166_s24 = smov 64   ;;  %s2418_s16 = smov 0  }
  0x2b   : > { %v685_v10 = vld [vmem:[#allocation7] sm:$0xff] }
  0x2c   : > { %v692_v12 = vsel %vm691_vm1, %v685_v10, 0.0  ;;  %v686_v14 = vld [vmem:[#allocation7 + $0x8] sm:$0xff] }
  0x2d   : > { %v687_v9 = vld [vmem:[#allocation7 + $0x10] sm:$0xff]  ;;  %693 = vadd.xlane.f32.xlu0 %v692_v12  ;;  %v695_v16 = vsel %vm691_vm1, %v686_v14, 0.0  ;;  %836 = vmatpush.bf16.msra.mxu0 %v1963_v49 }
  0x2e   : > { %v698_v11 = vsel %vm691_vm1, %v687_v9, 0.0  ;;  %v688_v13 = vld [vmem:[#allocation7 + $0x18] sm:$0xff]  ;;  %1982 = vmatpush.bf16.msra.mxu1 %v1963_v49  ;;  %s2654_s30 = scalar_lea.vmem %s2653_s20, %s2275_s18 }
  0x2f   : > { %699 = vadd.xlane.f32.xlu1 %v698_v11  ;;  %v701_v15 = vsel %vm691_vm1, %v688_v13, 0.0  ;;  %v2046_v18 = vpop.eup %2045 }
  0x30   : > { %v705_v19 = vmul.f32 32.0, %v2046_v18  ;;  %vm709_vm2 = vweird.f32 %v2046_v18 }
  0x32   : > { %v706_v20 = vsub.f32 1.0, %v705_v19  ;;  %v2042_v19 = vld [vmem:[%s2652_s27] ss:$0 sm:$0xff] }
  0x34   : > { %v707_v21 = vmul.f32 %v2046_v18, %v706_v20 }
  0x35   : > { %696 = vadd.xlane.f32.xlu0 %v695_v16 }
  0x36   : > { %v708_v22 = vadd.f32 %v2046_v18, %v707_v21 }
  0x37   : > { %702 = vadd.xlane.f32.xlu1 %v701_v15 }
  0x38   : > { %v2351_v23 = vsel %vm709_vm2, %v2046_v18, %v708_v22 }
  0xa0   : > { %v694_v25 = vpop.xlane.xlu0 %693 }
  0xa1   : > { %v711_v27 = vmul.f32 %v2351_v23, %v694_v25 }
  0xa2   : > { %v700_v24 = vpop.xlane.xlu1 %699 }
  0xa3   : > { %v713_v26 = vmul.f32 %v2351_v23, %v700_v24  ;;  %v2357_v29 = vsub.f32 %v685_v10, %v711_v27  ;;  %v2043_v27 = vld [vmem:[%s2654_s30] ss:$0 sm:$0xff] }
  0xa5   : > { %v2355_v28 = vsub.f32 %v687_v9, %v713_v26  ;;  %v719_v31 = vmul.f32 %v2357_v29, %v2357_v29 }
  0xa7   : > { %v721_v30 = vmul.f32 %v2355_v28, %v2355_v28  ;;  %v723_v33 = vsel %vm691_vm1, %v719_v31, 0.0 }
  0xa8   : > { %724 = vadd.xlane.f32.xlu2 %v723_v33  ;;  %v697_v35 = vpop.xlane.xlu0 %696 }
  0xa9   : > { %v729_v32 = vsel %vm691_vm1, %v721_v30, 0.0  ;;  %v712_v37 = vmul.f32 %v2351_v23, %v697_v35 }
  0xaa   : > { %v703_v34 = vpop.xlane.xlu1 %702  ;;  %730 = vadd.xlane.f32.xlu0 %v729_v32 }
  0xab   : > { %v714_v36 = vmul.f32 %v2351_v23, %v703_v34  ;;  %v2369_v39 = vsub.f32 %v686_v14, %v712_v37 }
  0xad   : > { %v2367_v38 = vsub.f32 %v688_v13, %v714_v36  ;;  %v720_v41 = vmul.f32 %v2369_v39, %v2369_v39 }
  0xaf   : > { %v722_v40 = vmul.f32 %v2367_v38, %v2367_v38  ;;  %v726_v43 = vsel %vm691_vm1, %v720_v41, 0.0 }
  0xb0   : > { %727 = vadd.xlane.f32.xlu2 %v726_v43 }
  0xb1   : > { %v732_v42 = vsel %vm691_vm1, %v722_v40, 0.0 }
  0xb2   : > { %733 = vadd.xlane.f32.xlu1 %v732_v42 }
 0x11b   : > { %v725_v45 = vpop.xlane.xlu2 %724 }
 0x11c   : > { %v735_v47 = vmul.f32 %v725_v45, %v2351_v23 }
 0x11d   : > { %v731_v46 = vpop.xlane.xlu0 %730 }
 0x11e   : > { %v737_v48 = vmul.f32 %v731_v46, %v2351_v23  ;;  %v739_v50 = vadd.f32 1e-05, %v735_v47 }
 0x120   : > { %v741_v51 = vadd.f32 1e-05, %v737_v48  ;;  %2047 = vrsqrt.f32 %v739_v50  ;;  %vm749_vm6 = vweird.f32 %v739_v50 }
 0x122   : > { %2049 = vrsqrt.f32 %v741_v51  ;;  %vm769_vm3 = vweird.f32 %v741_v51 }
 0x123   : > { %v728_v53 = vpop.xlane.xlu2 %727 }
 0x124   : > { %v736_v55 = vmul.f32 %v728_v53, %v2351_v23 }
 0x125   : > { %v734_v52 = vpop.xlane.xlu1 %733 }
 0x126   : > { %v738_v54 = vmul.f32 %v734_v52, %v2351_v23  ;;  %v2048_v56 = vpop.eup %2047  ;;  %v740_v58 = vadd.f32 1e-05, %v736_v55 }
 0x127   : > { %v744_v60 = vmul.f32 %v2048_v56, %v739_v50  ;;  %vm750_vm5 = vweird.f32 %v2048_v56 }
 0x128   : > { %v742_v57 = vadd.f32 1e-05, %v738_v54  ;;  %v2050_v59 = vpop.eup %2049  ;;  %vm751_vm8 = vmor %vm749_vm6, %vm750_vm5  ;;  %vm759_vm13 = vweird.f32 %v740_v58 }
 0x129   : > { %v764_v61 = vmul.f32 %v2050_v59, %v741_v51  ;;  %v745_v62 = vmul.f32 %v2048_v56, %v744_v60  ;;  %vm770_vm4 = vweird.f32 %v2050_v59 }
 0x12a   : > { %2051 = vrsqrt.f32 %v742_v57  ;;  %vm771_vm7 = vmor %vm769_vm3, %vm770_vm4  ;;  %vm779_vm9 = vweird.f32 %v742_v57 }
 0x12b   : > { %2053 = vrsqrt.f32 %v740_v58  ;;  %v765_v63 = vmul.f32 %v2050_v59, %v764_v61  ;;  %v746_v0 = vmul.f32 0.5, %v745_v62  ;;  %v901_v61 = vlaneseq }
 0x12d   : > { %v766_v1 = vmul.f32 0.5, %v765_v63  ;;  %v747_v2 = vsub.f32 1.5, %v746_v0  ;;  %v902_v62 = vshrl.u32 %v901_v61, 7  ;;  %v904_v63 = vand.u32 127, %v901_v61 }
 0x12f   : > { %v767_v4 = vsub.f32 1.5, %v766_v1  ;;  %v748_v7 = vmul.f32 %v2048_v56, %v747_v2  ;;  %vm905_vm0 = vcmp.gt.s32.totalorder %v904_v63, %v902_v62  ;;  %v2167_v1 = vmov 0.0  }
 0x130   : > { %v2052_v3 = vpop.eup %2051  ;;  %v2410_v2 = vsel %vm905_vm0, -1e+30, %v2167_v1 }
 0x131   : > { %v2054_v5 = vpop.eup %2053  ;;  %v774_v6 = vmul.f32 %v2052_v3, %v742_v57  ;;  %v768_v8 = vmul.f32 %v2050_v59, %v767_v4  ;;  %v752_v14 = vsel %vm751_vm8, %v2048_v56, %v748_v7  ;;  %vm780_vm10 = vweird.f32 %v2052_v3 }
 0x132   : > { %v754_v9 = vmul.f32 %v2054_v5, %v740_v58  ;;  %vm760_vm11 = vweird.f32 %v2054_v5  ;;  %v783_v20 = vmul.f32 %v752_v14, %v2357_v29  ;;  %vm781_vm12 = vmor %vm779_vm9, %vm780_vm10 }
 0x133   : > { %v775_v10 = vmul.f32 %v2052_v3, %v774_v6  ;;  %v772_v12 = vsel %vm771_vm7, %v2050_v59, %v768_v8  ;;  %vm761_vm14 = vmor %vm759_vm13, %vm760_vm11 }
 0x134   : > { %v755_v11 = vmul.f32 %v2054_v5, %v754_v9  ;;  %v785_v17 = vmul.f32 %v772_v12, %v2355_v28  ;;  %v790_v31 = vmul.f32 %v2042_v19, %v783_v20 }
 0x135   : > { %v776_v13 = vmul.f32 0.5, %v775_v10 }
 0x136   : > { %v756_v15 = vmul.f32 0.5, %v755_v11  ;;  %v792_v28 = vmul.f32 %v2042_v19, %v785_v17  ;;  %v797_v35 = vadd.f32 %v2043_v27, %v790_v31 }
 0x137   : > { %v777_v16 = vsub.f32 1.5, %v776_v13 }
 0x138   : > { %v757_v18 = vsub.f32 1.5, %v756_v15  ;;  %v799_v33 = vadd.f32 %v2043_v27, %v792_v28 }
 0x139   : > { %v778_v21 = vmul.f32 %v2052_v3, %v777_v16 }
 0x13a   : > { %v758_v22 = vmul.f32 %v2054_v5, %v757_v18 }
 0x13b   : > { %v782_v24 = vsel %vm781_vm12, %v2052_v3, %v778_v21 }
 0x13c   : > { %v786_v25 = vmul.f32 %v782_v24, %v2367_v38  ;;  %v762_v26 = vsel %vm761_vm14, %v2054_v5, %v758_v22  ;;  %v2044_v38 = vld [vmem:[%s2655_s15] ss:$0 sm:$0xff] }
 0x13d   : > { %v784_v30 = vmul.f32 %v762_v26, %v2369_v39 }
 0x13e   : > { %v793_v29 = vmul.f32 %v2042_v19, %v786_v25 }
 0x13f   : > { %v791_v32 = vmul.f32 %v2042_v19, %v784_v30 }
 0x140   : > { %v800_v34 = vadd.f32 %v2043_v27, %v793_v29 }
 0x141   : > { %v798_v36 = vadd.f32 %v2043_v27, %v791_v32 }
 0x142   : > { %v802_v37 = vpack.c.bf16 %v800_v34, %v799_v33 }
 0x143   : > { %v801_v40 = vpack.c.bf16 %v798_v36, %v797_v35 }
 0x144   : > { %1869 = vmatmul.msk.bf16.vlgmr.msra.gmra.mxu1 %vm691_vm1, %v802_v37 }
 0x145   : > { %1868 = vmatmul.msk.bf16.vlgmr.msra.gmra.mxu0 %vm691_vm1, %v801_v40 }
 0x1c1   : > { %v843_v41 = vpop.f32.mrf.mxu1 }
 0x1c2   : > { %v838_v39 = vpop.f32.mrf.mxu0  ;;  %v844_v42 = vadd.f32 %v2044_v38, %v843_v41 }
 0x1c3   : > { %v839_v43 = vadd.f32 %v2044_v38, %v838_v39 }
 0x1c4   : > { %v850_v44 = vmul.f32 0.35355338, %v844_v42  ;;  %v863_v45 = vpack.c.bf16 %v844_v42, %v844_v42 }
 0x1c5   : > { %v848_v46 = vmul.f32 0.35355338, %v839_v43  ;;  %v861_v47 = vpack.c.bf16 %v839_v43, %v839_v43 }
 0x1c6   : > { %v854_v48 = vpack.c.bf16 %v850_v44, %v850_v44  ;;  %873 = vrot.lane.b32.xlu1 %v863_v45, %s2165_s21 }
 0x1c7   : > { %v852_v49 = vpack.c.bf16 %v848_v46, %v848_v46  ;;  %885 = vrot.lane.b32.xlu0 %v861_v47, %s2166_s24  ;;  %869 = vrot.lane.b32.xlu2 %v861_v47, %s2165_s21 }
 0x1c8   : > { %859 = vst.msk [vmem:[#allocation2 + $0x8] sm:$0xf] %vm856_vm15, %v854_v48 }
 0x1c9   : > { %857 = vst.msk [vmem:[#allocation2] sm:$0xf] %vm856_vm15, %v852_v49  ;;  %v845_v50 = vpop.f32.mrf.mxu1 }
 0x1ca   : > { %v840_v51 = vpop.f32.mrf.mxu0  ;;  %v846_v52 = vadd.f32 %v2044_v38, %v845_v50 }
 0x1cb   : > { %v841_v53 = vadd.f32 %v2044_v38, %v840_v51 }
 0x1cc   : > { %v851_v54 = vmul.f32 0.35355338, %v846_v52  ;;  %v864_v55 = vpack.c.bf16 %v846_v52, %v846_v52 }
 0x1cd   : > { %v849_v56 = vmul.f32 0.35355338, %v841_v53  ;;  %v862_v57 = vpack.c.bf16 %v841_v53, %v841_v53 }
 0x1ce   : > { %v855_v58 = vpack.c.bf16 %v851_v54, %v851_v54  ;;  %889 = vrot.lane.b32.xlu1 %v863_v45, %s2166_s24 }
 0x1cf   : > { %v853_v59 = vpack.c.bf16 %v849_v56, %v849_v56  ;;  %871 = vrot.lane.b32.xlu0 %v862_v57, %s2165_s21  ;;  %875 = vrot.lane.b32.xlu2 %v864_v55, %s2165_s21 }
 0x1d0   : > { %860 = vst.msk [vmem:[#allocation2 + $0xc] sm:$0xf] %vm856_vm15, %v855_v58 }
 0x1d1   : > { %858 = vst.msk [vmem:[#allocation2 + $0x4] sm:$0xf] %vm856_vm15, %v853_v59 }
 0x1d7   : > { %891 = vrot.lane.b32.xlu0 %v864_v55, %s2166_s24  ;;  %887 = vrot.lane.b32.xlu2 %v862_v57, %s2166_s24 }
 0x221   : > { %v870_v60 = vpop.permute.xlu2 %869 }
 0x222   : > { %881 = vst.msk [vmem:[#allocation3] sm:$0xf] %vm856_vm15, %v870_v60 }
 0x229   : > { %v876_v0 = vpop.permute.xlu2 %875 }
 0x22a   : > { %884 = vst.msk [vmem:[#allocation3 + $0xc] sm:$0xf] %vm856_vm15, %v876_v0 }
 0x231   : > { %v888_v3 = vpop.permute.xlu2 %887 }
 0x232   : > { %898 = vst.msk [vmem:[#allocation4 + $0x4] sm:$0xf] %vm856_vm15, %v888_v3 }
 0x238   : > { %v874_v4 = vpop.permute.xlu1 %873 }
 0x239   : > { %883 = vst.msk [vmem:[#allocation3 + $0x8] sm:$0xf] %vm856_vm15, %v874_v4  ;;  %v886_v5 = vpop.permute.xlu0 %885 }
 0x23a   : > { %897 = vst.msk [vmem:[#allocation4] sm:$0xf] %vm856_vm15, %v886_v5 }
 0x240   : > { %v890_v6 = vpop.permute.xlu1 %889 }
 0x241   : > { %899 = vst.msk [vmem:[#allocation4 + $0x8] sm:$0xf] %vm856_vm15, %v890_v6  ;;  %v872_v7 = vpop.permute.xlu0 %871 }
 0x242   : > { %882 = vst.msk [vmem:[#allocation3 + $0x4] sm:$0xf] %vm856_vm15, %v872_v7 }
 0x249   : > { %v892_v8 = vpop.permute.xlu0 %891 }
 0x24a   : > { %900 = vst.msk [vmem:[#allocation4 + $0xc] sm:$0xf] %vm856_vm15, %v892_v8 }
 0x24b LB: >> { %s2424_s23 = sshll.u32 %s2162_s16, 2  ;;  %vm922_vm2 = vcmask 64512   ;;  %s2168_s19 = smov 112   ;;  %vm957_vm3 = vcmask 1043456   ;;  %vm1173_vm4 = vcmask 130048   ;;  %vm1176_vm5 = vcmask 195584   ;;  %s2162_s16 = sphi %s2418_s16, %s912_s16  }
 0x24c   : >> { %s917_s27 = scalar_lea.vmem [#allocation3], %s2424_s23  ;;  %s914_s25 = scalar_lea.vmem [#allocation2], %s2424_s23 }
 0x24d   : >> { %v918_v9 = vld [vmem:[%s917_s27] sm:$0xf]  ;;  %s2169_s20 = smov 104   ;;  %s2170_s30 = smov 120  }
 0x24e   : >> { %v927_v10 = vsel %vm922_vm2, %v918_v9, 0  ;;  %v915_v11 = vld [vmem:[%s914_s25] sm:$0xf]  ;;  %v981_v12 = vunpack.c.l.b16 %v918_v9  ;;  %s920_s17 = scalar_lea.vmem [#allocation4], %s2424_s23  ;;  %s2171_s14 = smov 8  }
 0x24f   : >> { %936 = vmatpush.bf16.xpose.msra.mxu0 %v927_v10  ;;  %v976_v14 = vunpack.c.l.b16 %v915_v11  ;;  %s2172_s15 = smov 16   ;;  %s2173_s21 = smov 24  }
 0x250   : >> { %v982_v13 = vpack.c.b16 %v981_v12, %v981_v12  ;;  %s1181_s24 = scalar_lea.vmem [#allocation5], %s2424_s23  ;;  %s912_s16 = sadd.s32 1, %s2162_s16  }
 0x251   : >> { %v977_v15 = vpack.c.b16 %v976_v14, %v976_v14  ;;  %v921_v29 = vld [vmem:[%s920_s17] sm:$0xf]  ;;  %p909_p6 = scmp.ge.s32.totalorder %s912_s16, 4  }
 0x252   : >> { %1043 = vrot.lane.b32.xlu2 %v982_v13, %s2168_s19  ;;  %v959_v32 = vsel %vm957_vm3, %v921_v29, 0  ;;  %v1017_v55 = vunpack.c.l.b16 %v921_v29  ;;  %s2656_s27 = sld [smem:[#allocation14_spill]] (%p909_p6)  ;;  %p1954_p7 = scmp.ne.s32.totalorder (%p909_p6), %s2150_s29, 1 }
 0x253   : >> { %968 = vmatpush.bf16.msra.mxu1 %v959_v32 }
 0x254   : >> { %v1018_v56 = vpack.c.b16 %v1017_v55, %v1017_v55 }
 0x256   : >> { %1873 = vmatmul.msk.bf16.vlgmr.msra.gmra.mxu0 %vm922_vm2, %v915_v11 }
 0x25a   : >> { %1100 = vrot.lane.b32.xlu2 %v982_v13, %s2169_s20 }
 0x262   : >> { %1041 = vrot.lane.b32.xlu2 %v977_v15, %s2168_s19 }
 0x26a   : >> { %1098 = vrot.lane.b32.xlu2 %v977_v15, %s2169_s20 }
 0x2ac   : >> { %v1044_v20 = vpop.permute.xlu2 %1043 }
 0x2ad   : >> { %v1049_v33 = vsel %vm922_vm2, %v1044_v20, 0 }
 0x2ae   : >> { %1058 = vmatpush.bf16.xpose.msrb.mxu1 %v1049_v33 }
 0x2b4   : >> { %v1101_v21 = vpop.permute.xlu2 %1100 }
 0x2b5   : >> { %v1106_v27 = vsel %vm922_vm2, %v1101_v21, 0 }
 0x2b6   : >> { %1115 = vmatpush.bf16.xpose.msrb.mxu0 %v1106_v27 }
 0x2bc   : >> { %v1042_v26 = vpop.permute.xlu2 %1041 }
 0x2c4   : >> { %v1099_v31 = vpop.permute.xlu2 %1098 }
 0x2c5   : >> { %1879 = vmatmul.msk.bf16.vlgmr.msrb.gmra.mxu0 %vm922_vm2, %v1099_v31 }
 0x2d3   : >> { %v938_v16 = vpop.f32.mrf.mxu0 }
 0x2d4   : >> { %v939_v17 = vadd.f32 %v938_v16, %v2410_v2 }
 0x2d6   : >> { %v942_v18 = vsel %vm922_vm2, %v939_v17, -inf }
 0x2d7   : >> { %943 = vmax.xlane.f32.xlu0 %v942_v18 }
 0x2db   : >> { %v940_v19 = vpop.f32.mrf.mxu0 }
 0x2eb   : >> { %983 = vrot.lane.b32.xlu0 %v982_v13, %s2170_s30 }
 0x342   : >> { %v1117_v41 = vpop.f32.mrf.mxu0 }
 0x343   : >> { %v1118_v39 = vadd.f32 %v1117_v41, %v2410_v2 }
 0x345   : >> { %v1121_v42 = vsel %vm922_vm2, %v1118_v39, -inf }
 0x34a   : >> { %v944_v22 = vpop.xlane.xlu0 %943  ;;  %v1119_v43 = vpop.f32.mrf.mxu0 }
 0x34b   : >> { %v945_v24 = vsub.f32 %v939_v17, %v944_v22 }
 0x34d   : >> { %v946_v25 = vmul.f32 1.442695, %v945_v24 }
 0x34f   : >> { %2055 = vpow2.f32 %v946_v25 }
 0x355   : >> { %v2056_v28 = vpop.eup %2055 }
 0x356   : >> { %v948_v30 = vsel %vm922_vm2, %v2056_v28, 0.0 }
 0x357   : >> { %949 = vadd.xlane.f32.xlu1 %v948_v30 }
 0x35d   : >> { %v984_v34 = vpop.permute.xlu0 %983 }
 0x35e   : >> { %v989_v35 = vsel %vm922_vm2, %v984_v34, 0 }
 0x35f   : >> { %998 = vmatpush.bf16.xpose.msra.mxu2 %v989_v35 }
 0x370   : >> { %978 = vrot.lane.b32.xlu1 %v977_v15, %s2170_s30 }
 0x39a   : >> { %1122 = vmax.xlane.f32.xlu1 %v1121_v42 }
 0x3ca   : >> { %v950_v36 = vpop.xlane.xlu1 %949 }
 0x3cb   : >> { %2057 = vrcp.f32 %v950_v36 }
 0x3d1   : >> { %v2058_v37 = vpop.eup %2057 }
 0x3d2   : >> { %v952_v40 = vmul.f32 %v2058_v37, %v2056_v28 }
 0x3d4   : >> { %v953_v38 = vpack.c.bf16 %v952_v40, %v952_v40 }
 0x3d6   : >> { %1874 = vmatmul.msk.bf16.vlgmr.msra.gmra.mxu1 %vm922_vm2, %v953_v38 }
 0x3e2   : >> { %v979_v44 = vpop.permute.xlu1 %978 }
 0x3e3   : >> { %1875 = vmatmul.msk.bf16.vlgmr.msra.gmra.mxu2 %vm922_vm2, %v979_v44 }
 0x3e6   : >> { %1877 = vmatmul.msk.bf16.vlgmr.msrb.gmra.mxu1 %vm922_vm2, %v1042_v26 }
 0x40d   : >> { %v1123_v59 = vpop.xlane.xlu1 %1122 }
 0x40e   : >> { %v1124_v63 = vsub.f32 %v1118_v39, %v1123_v59  ;;  %v1243_v59 = vld [vmem:[#allocation7 + $0x8] sm:$0xff] (%p909_p6) }
 0x410   : >> { %v1125_v1 = vmul.f32 1.442695, %v1124_v63 }
 0x453   : >> { %v2450_v45 = vpop.f32.mrf.mxu1 }
 0x454   : >> { %v974_v44 = vpack.c.bf16 %v2450_v45, %v2450_v45  ;;  %v1968_v45 = vld [vmem:[%s2656_s27 + $0x8] sm:$0xff] (%p909_p6) }
 0x455   : > { %1229 = vmatpush.bf16.msra.mxu0 (%p909_p6), %v1968_v45 }
 0x45b   : >> { %v972_v46 = vpop.f32.mrf.mxu1 }
 0x463   : >> { %v1060_v47 = vpop.f32.mrf.mxu1 }
 0x464   : >> { %v1061_v48 = vadd.f32 %v1060_v47, %v2410_v2 }
 0x466   : >> { %v1000_v49 = vpop.f32.mrf.mxu2  ;;  %v1064_v50 = vsel %vm922_vm2, %v1061_v48, -inf }
 0x467   : >> { %v1001_v51 = vadd.f32 %v1000_v49, %v2410_v2  ;;  %1065 = vmax.xlane.f32.xlu2 %v1064_v50 }
 0x469   : >> { %v1004_v52 = vsel %vm922_vm2, %v1001_v51, -inf }
 0x46a   : >> { %1005 = vmax.xlane.f32.xlu0 %v1004_v52 }
 0x46b   : >> { %v1062_v53 = vpop.f32.mrf.mxu1 }
 0x46e   : >> { %v1002_v54 = vpop.f32.mrf.mxu2 }
 0x47f   : >> { %1019 = vrot.lane.b32.xlu2 %v1018_v56, %s2170_s30 }
 0x4da   : >> { %v1066_v57 = vpop.xlane.xlu2 %1065 }
 0x4db   : >> { %v1067_v58 = vsub.f32 %v1061_v48, %v1066_v57 }
 0x4dd   : >> { %v1068_v60 = vmul.f32 1.442695, %v1067_v58  ;;  %v1006_v61 = vpop.xlane.xlu0 %1005 }
 0x4de   : >> { %v1007_v62 = vsub.f32 %v1001_v51, %v1006_v61  ;;  %v1967_v51 = vld [vmem:[%s2656_s27] sm:$0xff] (%p909_p6) }
 0x4df   : >> { %2059 = vpow2.f32 %v1068_v60  ;;  %1230 = vmatpush.bf16.msra.mxu0 (%p909_p6), %v1967_v51 }
 0x4e0   : >> { %v1008_v0 = vmul.f32 1.442695, %v1007_v62 }
 0x4e2   : >> { %2061 = vpow2.f32 %v1008_v0  ;;  %v1020_v9 = vpop.permute.xlu2 %1019 }
 0x4e3   : >> { %2063 = vpow2.f32 %v1125_v1  ;;  %v1025_v10 = vsel %vm957_vm3, %v1020_v9, 0  ;;  %v1244_v1 = vld [vmem:[#allocation7 + $0x10] sm:$0xff] (%p909_p6) }
 0x4e4   : >> { %1034 = vmatpush.bf16.msra.mxu3 %v1025_v10 }
 0x4e5   : >> { %v2060_v3 = vpop.eup %2059 }
 0x4e6   : >> { %v1070_v4 = vsel %vm922_vm2, %v2060_v3, 0.0 }
 0x4e7   : >> { %1071 = vadd.xlane.f32.xlu1 %v1070_v4 }
 0x4e8   : >> { %v2062_v5 = vpop.eup %2061 }
 0x4e9   : >> { %v1010_v6 = vsel %vm922_vm2, %v2062_v5, 0.0  ;;  %v2064_v7 = vpop.eup %2063 }
 0x4ea   : >> { %1011 = vadd.xlane.f32.xlu0 %v1010_v6  ;;  %v1127_v8 = vsel %vm922_vm2, %v2064_v7, 0.0 }
 0x4f2   : >> { %1128 = vadd.xlane.f32.xlu0 %v1127_v8  ;;  %v1245_v8 = vld [vmem:[#allocation7 + $0x18] sm:$0xff] (%p909_p6) }
 0x500   : >> { %1076 = vrot.lane.b32.xlu1 %v1018_v56, %s2168_s19  ;;  %s2657_s19 = scalar_lea.vmem (%p909_p6), %s2630_s7, %s2275_s18 }
 0x501   : > { %v2071_v54 = vld [vmem:[%s2657_s19] ss:$0 sm:$0xff] (%p909_p6) }
 0x506   : >> { %1133 = vrot.lane.b32.xlu0 %v1018_v56, %s2169_s20  ;;  %v1242_v56 = vld [vmem:[#allocation7] sm:$0xff] (%p909_p6) }
 0x55a   : >> { %v1072_v14 = vpop.xlane.xlu1 %1071 }
 0x55d   : >> { %v1012_v11 = vpop.xlane.xlu0 %1011 }
 0x55e   : >> { %2065 = vrcp.f32 %v1012_v11 }
 0x55f   : >> { %2067 = vrcp.f32 %v1072_v14 }
 0x564   : >> { %v2066_v12 = vpop.eup %2065 }
 0x565   : >> { %v1014_v13 = vmul.f32 %v2066_v12, %v2062_v5  ;;  %v1129_v16 = vpop.xlane.xlu0 %1128  ;;  %v2068_v17 = vpop.eup %2067 }
 0x566   : >> { %2069 = vrcp.f32 %v1129_v16  ;;  %v1074_v19 = vmul.f32 %v2068_v17, %v2060_v3 }
 0x567   : >> { %v1015_v15 = vpack.c.bf16 %v1014_v13, %v1014_v13 }
 0x568   : >> { %v1075_v24 = vpack.c.bf16 %v1074_v19, %v1074_v19 }
 0x569   : >> { %1876 = vmatmul.msk.bf16.vlgmr.msra.gmra.mxu3 %vm922_vm2, %v1015_v15 }
 0x56c   : >> { %v2070_v21 = vpop.eup %2069 }
 0x56d   : >> { %v1131_v22 = vmul.f32 %v2070_v21, %v2064_v7 }
 0x56f   : >> { %v1132_v27 = vpack.c.bf16 %v1131_v22, %v1131_v22 }
 0x572   : >> { %v1077_v18 = vpop.permute.xlu1 %1076 }
 0x573   : >> { %v1082_v20 = vsel %vm957_vm3, %v1077_v18, 0 }
 0x574   : >> { %1091 = vmatpush.bf16.msrb.mxu3 %v1082_v20 }
 0x578   : >> { %v1134_v25 = vpop.permute.xlu0 %1133 }
 0x579   : >> { %1878 = vmatmul.msk.bf16.vlgmr.msrb.gmra.mxu3 %vm922_vm2, %v1075_v24  ;;  %v1139_v26 = vsel %vm957_vm3, %v1134_v25, 0 }
 0x57a   : >> { %1148 = vmatpush.bf16.msrb.mxu2 %v1139_v26 }
 0x57d   : >> { %1880 = vmatmul.msk.bf16.vlgmr.msrb.gmra.mxu2 %vm922_vm2, %v1132_v27 }
 0x5ec   : >> { %v1036_v28 = vpop.f32.mrf.mxu3 }
 0x5ed   : >> { %v1040_v30 = vpack.c.bf16 %v1036_v28, %v1036_v28 }
 0x5ef   : >> { %v1156_v31 = vunpack.c.l.b16 %v1040_v30 }
 0x5f1   : >> { %v1157_v29 = vpack.c.b16 %v1156_v31, %v1156_v31 }
 0x5f3   : >> { %1158 = vrot.lane.b32.xlu2 %v1157_v29, %s2171_s14 }
 0x5f4   : >> { %v1038_v32 = vpop.f32.mrf.mxu3 }
 0x5fc   : >> { %v1093_v33 = vpop.f32.mrf.mxu3 }
 0x5fd   : >> { %v1097_v34 = vpack.c.bf16 %v1093_v33, %v1093_v33 }
 0x5ff   : >> { %v1161_v35 = vunpack.c.l.b16 %v1097_v34 }
 0x600   : >> { %v1150_v36 = vpop.f32.mrf.mxu2 }
 0x601   : >> { %v1162_v37 = vpack.c.b16 %v1161_v35, %v1161_v35  ;;  %v1154_v40 = vpack.c.bf16 %v1150_v36, %v1150_v36 }
 0x603   : >> { %v1166_v38 = vunpack.c.l.b16 %v1154_v40  ;;  %1163 = vrot.lane.b32.xlu2 %v1162_v37, %s2172_s15 }
 0x604   : >> { %v1095_v41 = vpop.f32.mrf.mxu3 }
 0x605   : >> { %v1167_v39 = vpack.c.b16 %v1166_v38, %v1166_v38  ;;  %v1972_v38 = vld [vmem:[%s2315_s4 + $0x8] sm:$0xff] (%p909_p6) }
 0x606   : > { %1424 = vmatpush.bf16.msra.mxu1 (%p909_p6), %v1972_v38  ;;  %v1980_v38 = vld [vmem:[%s2325_s22 + $0x38] sm:$0xff] (%p909_p6) }
 0x607   : >> { %1168 = vrot.lane.b32.xlu0 %v1167_v39, %s2173_s21  ;;  %1591 = vmatpush.bf16.msra.mxu2 (%p909_p6), %v1980_v38 }
 0x608   : >> { %v1152_v42 = vpop.f32.mrf.mxu2  ;;  %1983 = vmatpush.bf16.msra.mxu3 (%p909_p6), %v1980_v38 }
 0x64d   : >> { %v1159_v43 = vpop.permute.xlu2 %1158 }
 0x64e   : >> { %v1172_v47 = vsel %vm922_vm2, %v974_v44, %v1159_v43  ;;  %v1971_v44 = vld [vmem:[%s2315_s4] sm:$0xff] (%p909_p6) }
 0x64f   : > { %1425 = vmatpush.bf16.msra.mxu1 (%p909_p6), %v1971_v44 }
 0x65d   : >> { %v1164_v46 = vpop.permute.xlu2 %1163 }
 0x65e   : >> { %v1175_v48 = vsel %vm1173_vm4, %v1172_v47, %v1164_v46 }
 0x677   : > { %911 = sbr.rel (!%p909_p6) target bundleno = 587 (0x24b), region = 159 }
 0x679   : >> { %v1169_v49 = vpop.permute.xlu0 %1168 }
 0x67a   : >> { %v1178_v50 = vsel %vm1176_vm5, %v1175_v48, %v1169_v49 }
 0x67b   : >> { %1182 = vst.msk [vmem:[%s1181_s24] sm:$0xf] %vm856_vm15, %v1178_v50 }
 0x682   : > { %v1965_v52 = vld [vmem:[#allocation5] sm:$0xff]  ;;  %v1966_v53 = vld [vmem:[#allocation5 + $0x8] sm:$0xff] }
 0x683   : > { %1898 = vmatmul.msk.bf16.vlgmr.msra.gmra.mxu0 %vm691_vm1, %v1965_v52 }
 0x693   : > { %1899 = vmatmul.msk.bf16.gmra.mxu0 %vm691_vm1, %v1966_v53 }
 0x700   : > { %v1232_v55 = vpop.f32.mrf.mxu0 }
 0x701   : > { %v1233_v2 = vadd.f32 %v2071_v54, %v1232_v55  ;;  %v2072_v55 = vld [vmem:[%s645_s3] ss:$0 sm:$0xff] }
 0x703   : > { %v1246_v57 = vadd.f32 %v1242_v56, %v1233_v2 }
 0x705   : > { %1250 = vst.msk [vmem:[#allocation7] sm:$0xff] %vm691_vm1, %v1246_v57  ;;  %v2073_v57 = vld [vmem:[%s648_s28] ss:$0 sm:$0xff] }
 0x708   : > { %v1234_v58 = vpop.f32.mrf.mxu0 }
 0x709   : > { %v1235_v60 = vadd.f32 %v2071_v54, %v1234_v58 }
 0x70b   : > { %v1247_v61 = vadd.f32 %v1243_v59, %v1235_v60 }
 0x70c   : > { %v2486_v62 = vld [vmem:[#allocation7] sm:$0xff] }
 0x70d   : > { %1251 = vst.msk [vmem:[#allocation7 + $0x8] sm:$0xff] %vm691_vm1, %v1247_v61  ;;  %v1260_v63 = vsel %vm691_vm1, %v2486_v62, 0.0 }
 0x70e   : > { %1261 = vadd.xlane.f32.xlu0 %v1260_v63 }
 0x710   : > { %v1237_v0 = vpop.f32.mrf.mxu0 }
 0x711   : > { %v1238_v3 = vadd.f32 %v2071_v54, %v1237_v0 }
 0x713   : > { %v1248_v4 = vadd.f32 %v1244_v1, %v1238_v3 }
 0x714   : > { %v2491_v5 = vld [vmem:[#allocation7 + $0x8] sm:$0xff] }
 0x715   : > { %1252 = vst.msk [vmem:[#allocation7 + $0x10] sm:$0xff] %vm691_vm1, %v1248_v4  ;;  %v1263_v6 = vsel %vm691_vm1, %v2491_v5, 0.0 }
 0x716   : > { %1264 = vadd.xlane.f32.xlu0 %v1263_v6 }
 0x718   : > { %v1239_v7 = vpop.f32.mrf.mxu0 }
 0x719   : > { %v1240_v9 = vadd.f32 %v2071_v54, %v1239_v7 }
 0x71b   : > { %v1249_v10 = vadd.f32 %v1245_v8, %v1240_v9 }
 0x71c   : > { %v2496_v11 = vld [vmem:[#allocation7 + $0x10] sm:$0xff] }
 0x71d   : > { %1253 = vst.msk [vmem:[#allocation7 + $0x18] sm:$0xff] %vm691_vm1, %v1249_v10  ;;  %v1266_v12 = vsel %vm691_vm1, %v2496_v11, 0.0 }
 0x71e   : > { %1267 = vadd.xlane.f32.xlu1 %v1266_v12 }
 0x724   : > { %v2501_v13 = vld [vmem:[#allocation7 + $0x18] sm:$0xff] }
 0x725   : > { %v1269_v14 = vsel %vm691_vm1, %v2501_v13, 0.0 }
 0x726   : > { %1270 = vadd.xlane.f32.xlu1 %v1269_v14 }
 0x781   : > { %v1262_v15 = vpop.xlane.xlu0 %1261 }
 0x782   : > { %v1272_v16 = vmul.f32 %v1262_v15, %v2351_v23 }
 0x784   : > { %v1276_v17 = vsub.f32 %v2486_v62, %v1272_v16 }
 0x786   : > { %v1280_v18 = vmul.f32 %v1276_v17, %v1276_v17 }
 0x788   : > { %v1284_v19 = vsel %vm691_vm1, %v1280_v18, 0.0 }
 0x789   : > { %1285 = vadd.xlane.f32.xlu2 %v1284_v19  ;;  %v1265_v20 = vpop.xlane.xlu0 %1264 }
 0x78a   : > { %v1273_v21 = vmul.f32 %v1265_v20, %v2351_v23 }
 0x78c   : > { %v2510_v22 = vsub.f32 %v2491_v5, %v1273_v21 }
 0x78e   : > { %v1281_v24 = vmul.f32 %v2510_v22, %v2510_v22 }
 0x790   : > { %v1287_v25 = vsel %vm691_vm1, %v1281_v24, 0.0 }
 0x791   : > { %v1268_v26 = vpop.xlane.xlu1 %1267  ;;  %1288 = vadd.xlane.f32.xlu2 %v1287_v25 }
 0x792   : > { %v1274_v27 = vmul.f32 %v1268_v26, %v2351_v23 }
 0x794   : > { %v2517_v28 = vsub.f32 %v2496_v11, %v1274_v27 }
 0x796   : > { %v1282_v30 = vmul.f32 %v2517_v28, %v2517_v28 }
 0x798   : > { %v1290_v31 = vsel %vm691_vm1, %v1282_v30, 0.0 }
 0x799   : > { %v1271_v29 = vpop.xlane.xlu1 %1270  ;;  %1291 = vadd.xlane.f32.xlu0 %v1290_v31 }
 0x79a   : > { %v1275_v32 = vmul.f32 %v1271_v29, %v2351_v23 }
 0x79c   : > { %v2524_v33 = vsub.f32 %v2501_v13, %v1275_v32 }
 0x79e   : > { %v1283_v34 = vmul.f32 %v2524_v33, %v2524_v33 }
 0x7a0   : > { %v1293_v35 = vsel %vm691_vm1, %v1283_v34, 0.0 }
 0x7a1   : > { %1294 = vadd.xlane.f32.xlu1 %v1293_v35 }
 0x7fc   : > { %v1286_v36 = vpop.xlane.xlu2 %1285 }
 0x7fd   : > { %v1296_v37 = vmul.f32 %v1286_v36, %v2351_v23 }
 0x7ff   : > { %v1300_v40 = vadd.f32 1e-05, %v1296_v37 }
 0x801   : > { %2076 = vrsqrt.f32 %v1300_v40  ;;  %vm1310_vm7 = vweird.f32 %v1300_v40 }
 0x804   : > { %v1289_v41 = vpop.xlane.xlu2 %1288 }
 0x805   : > { %v1297_v39 = vmul.f32 %v1289_v41, %v2351_v23  ;;  %v1979_v41 = vld [vmem:[%s2325_s22 + $0x30] sm:$0xff] }
 0x806   : > { %1592 = vmatpush.bf16.msra.mxu2 %v1979_v41  ;;  %1984 = vmatpush.bf16.msra.mxu3 %v1979_v41 }
 0x807   : > { %v2077_v42 = vpop.eup %2076  ;;  %v1301_v43 = vadd.f32 1e-05, %v1297_v39  ;;  %v1977_v39 = vld [vmem:[%s2325_s22 + $0x20] sm:$0xff] }
 0x808   : > { %v1305_v46 = vmul.f32 %v2077_v42, %v1300_v40  ;;  %vm1311_vm6 = vweird.f32 %v2077_v42 }
 0x809   : > { %2078 = vrsqrt.f32 %v1301_v43  ;;  %vm1312_vm8 = vmor %vm1310_vm7, %vm1311_vm6  ;;  %vm1320_vm10 = vweird.f32 %v1301_v43 }
 0x80a   : > { %v1306_v47 = vmul.f32 %v2077_v42, %v1305_v46 }
 0x80c   : > { %v1307_v48 = vmul.f32 0.5, %v1306_v47  ;;  %v1292_v49 = vpop.xlane.xlu0 %1291  ;;  %v1975_v47 = vld [vmem:[%s2325_s22 + $0x10] sm:$0xff] }
 0x80d   : > { %v1298_v50 = vmul.f32 %v1292_v49, %v2351_v23 }
 0x80e   : > { %v1308_v45 = vsub.f32 1.5, %v1307_v48 }
 0x80f   : > { %v2079_v51 = vpop.eup %2078  ;;  %v1302_v52 = vadd.f32 1e-05, %v1298_v50  ;;  %v1974_v50 = vld [vmem:[%s2325_s22 + $0x8] sm:$0xff] }
 0x810   : > { %v1309_v53 = vmul.f32 %v2077_v42, %v1308_v45  ;;  %v1315_v54 = vmul.f32 %v2079_v51, %v1301_v43  ;;  %vm1321_vm9 = vweird.f32 %v2079_v51  ;;  %v1976_v43 = vld [vmem:[%s2325_s22 + $0x18] sm:$0xff] }
 0x811   : > { %2080 = vrsqrt.f32 %v1302_v52  ;;  %vm1322_vm11 = vmor %vm1320_vm10, %vm1321_vm9  ;;  %vm1330_vm13 = vweird.f32 %v1302_v52 }
 0x812   : > { %v1313_v56 = vsel %vm1312_vm8, %v2077_v42, %v1309_v53  ;;  %v1316_v2 = vmul.f32 %v2079_v51, %v1315_v54  ;;  %v2074_v42 = vld [vmem:[%s656_s6] ss:$0 sm:$0xff] }
 0x813   : > { %v1344_v58 = vmul.f32 %v1313_v56, %v1276_v17 }
 0x814   : > { %v1317_v59 = vmul.f32 0.5, %v1316_v2  ;;  %v1295_v60 = vpop.xlane.xlu1 %1294 }
 0x815   : > { %v1351_v61 = vmul.f32 %v2072_v55, %v1344_v58  ;;  %v1299_v63 = vmul.f32 %v1295_v60, %v2351_v23 }
 0x816   : > { %v1318_v0 = vsub.f32 1.5, %v1317_v59 }
 0x817   : > { %v2081_v1 = vpop.eup %2080  ;;  %v1358_v3 = vadd.f32 %v2073_v57, %v1351_v61  ;;  %v1303_v4 = vadd.f32 1e-05, %v1299_v63 }
 0x818   : > { %v1319_v6 = vmul.f32 %v2079_v51, %v1318_v0  ;;  %v1325_v7 = vmul.f32 %v2081_v1, %v1302_v52  ;;  %vm1331_vm12 = vweird.f32 %v2081_v1  ;;  %v1973_v52 = vld [vmem:[%s2325_s22] sm:$0xff] }
 0x819   : > { %v1362_v8 = vpack.c.bf16 %v1358_v3, %v1358_v3  ;;  %2082 = vrsqrt.f32 %v1303_v4  ;;  %vm1332_vm14 = vmor %vm1330_vm13, %vm1331_vm12  ;;  %vm1340_vm2 = vweird.f32 %v1303_v4 }
 0x81a   : > { %v1323_v9 = vsel %vm1322_vm11, %v2079_v51, %v1319_v6  ;;  %v1326_v10 = vmul.f32 %v2081_v1, %v1325_v7 }
 0x81b   : > { %1366 = vst.msk [vmem:[#allocation2] sm:$0xf] %vm856_vm15, %v1362_v8  ;;  %v1345_v12 = vmul.f32 %v1323_v9, %v2510_v22 }
 0x81c   : > { %v1327_v14 = vmul.f32 0.5, %v1326_v10  ;;  %v2075_v10 = vld [vmem:[%s664_s26] ss:$0 sm:$0xff] }
 0x81d   : > { %v1352_v15 = vmul.f32 %v2072_v55, %v1345_v12  ;;  %1374 = vst.msk [vmem:[#allocation6] sm:$0xff] %vm691_vm1, %v2075_v10 }
 0x81e   : > { %v1328_v23 = vsub.f32 1.5, %v1327_v14  ;;  %1375 = vst.msk [vmem:[#allocation6 + $0x8] sm:$0xff] %vm691_vm1, %v2075_v10 }
 0x81f   : > { %v2083_v16 = vpop.eup %2082  ;;  %v1359_v17 = vadd.f32 %v2073_v57, %v1352_v15  ;;  %1376 = vst.msk [vmem:[#allocation6 + $0x10] sm:$0xff] %vm691_vm1, %v2075_v10 }
 0x820   : > { %v1329_v18 = vmul.f32 %v2081_v1, %v1328_v23  ;;  %v1335_v19 = vmul.f32 %v2083_v16, %v1303_v4  ;;  %vm1341_vm0 = vweird.f32 %v2083_v16  ;;  %1377 = vst.msk [vmem:[#allocation6 + $0x18] sm:$0xff] %vm691_vm1, %v2075_v10 }
 0x821   : > { %v1363_v20 = vpack.c.bf16 %v1359_v17, %v1359_v17  ;;  %vm1342_vm3 = vmor %vm1340_vm2, %vm1341_vm0 }
 0x822   : > { %v1333_v21 = vsel %vm1332_vm14, %v2081_v1, %v1329_v18  ;;  %v1336_v24 = vmul.f32 %v2083_v16, %v1335_v19 }
 0x823   : > { %1367 = vst.msk [vmem:[#allocation2 + $0x4] sm:$0xf] %vm856_vm15, %v1363_v20  ;;  %v1346_v25 = vmul.f32 %v1333_v21, %v2517_v28 }
 0x824   : > { %v1337_v26 = vmul.f32 0.5, %v1336_v24 }
 0x825   : > { %v1353_v27 = vmul.f32 %v2072_v55, %v1346_v25 }
 0x826   : > { %v1338_v22 = vsub.f32 1.5, %v1337_v26 }
 0x827   : > { %v1360_v30 = vadd.f32 %v2073_v57, %v1353_v27 }
 0x828   : > { %v1339_v31 = vmul.f32 %v2083_v16, %v1338_v22 }
 0x829   : > { %v1364_v29 = vpack.c.bf16 %v1360_v30, %v1360_v30 }
 0x82a   : > { %v1343_v32 = vsel %vm1342_vm3, %v2083_v16, %v1339_v31  ;;  %v1969_v34 = vld [vmem:[#allocation2] sm:$0xff] }
 0x82b   : > { %1368 = vst.msk [vmem:[#allocation2 + $0x8] sm:$0xf] %vm856_vm15, %v1364_v29  ;;  %v1347_v35 = vmul.f32 %v1343_v32, %v2524_v33  ;;  %1916 = vmatmul.msk.bf16.vlgmr.msra.gmra.mxu1 %vm691_vm1, %v1969_v34  ;;  %v1978_v33 = vld [vmem:[%s2325_s22 + $0x28] sm:$0xff] }
 0x82c   : > { %1593 = vmatpush.bf16.msra.mxu2 %v1978_v33  ;;  %1985 = vmatpush.bf16.msra.mxu3 %v1978_v33 }
 0x82d   : > { %v1354_v28 = vmul.f32 %v2072_v55, %v1347_v35 }
 0x82f   : > { %v1361_v36 = vadd.f32 %v2073_v57, %v1354_v28 }
 0x830   : > { %1594 = vmatpush.bf16.msra.mxu2 %v1977_v39  ;;  %1986 = vmatpush.bf16.msra.mxu3 %v1977_v39 }
 0x831   : > { %v1365_v37 = vpack.c.bf16 %v1361_v36, %v1361_v36 }
 0x833   : > { %1369 = vst.msk [vmem:[#allocation2 + $0xc] sm:$0xf] %vm856_vm15, %v1365_v37 }
 0x834   : > { %1595 = vmatpush.bf16.msra.mxu2 %v1976_v43  ;;  %1987 = vmatpush.bf16.msra.mxu3 %v1976_v43 }
 0x838   : > { %1596 = vmatpush.bf16.msra.mxu2 %v1975_v47  ;;  %1988 = vmatpush.bf16.msra.mxu3 %v1975_v47 }
 0x83a   : > { %v1970_v40 = vld [vmem:[#allocation2 + $0x8] sm:$0xff] }
 0x83b   : > { %1917 = vmatmul.msk.bf16.gmra.mxu1 %vm691_vm1, %v1970_v40 }
 0x83c   : > { %1597 = vmatpush.bf16.msra.mxu2 %v1974_v50  ;;  %1989 = vmatpush.bf16.msra.mxu3 %v1974_v50 }
 0x840   : > { %1598 = vmatpush.bf16.msra.mxu2 %v1973_v52  ;;  %1990 = vmatpush.bf16.msra.mxu3 %v1973_v52 }
 0x8a8   : > { %v1427_v44 = vpop.f32.mrf.mxu1 }
 0x8a9   : > { %v2564_v46 = vadd.f32 %v2074_v42, %v1427_v44 }
 0x8ab   : > { %v1918_v48 = vmul.f32 -1.702, %v2564_v46 }
 0x8ad   : > { %v1445_v49 = vmul.f32 1.442695, %v1918_v48 }
 0x8af   : > { %2084 = vpow2.f32 %v1445_v49 }
 0x8b0   : > { %v1429_v45 = vpop.f32.mrf.mxu1 }
 0x8b1   : > { %v2569_v51 = vadd.f32 %v2074_v42, %v1429_v45 }
 0x8b3   : > { %v1919_v53 = vmul.f32 -1.702, %v2569_v51 }
 0x8b5   : > { %v2085_v54 = vpop.eup %2084  ;;  %v1447_v55 = vmul.f32 1.442695, %v1919_v53 }
 0x8b6   : > { %v1453_v56 = vadd.f32 1.0, %v2085_v54 }
 0x8b7   : > { %2086 = vpow2.f32 %v1447_v55 }
 0x8b8   : > { %2088 = vrcp.f32 %v1453_v56  ;;  %v1432_v2 = vpop.f32.mrf.mxu1  ;;  %v1468_v16 = vand.u32 2147483648, %v1453_v56  ;;  %vm1462_vm4 = vweird.f32 %v1453_v56  ;;  %v1466_v17 = vand.u32 2147483647, %v1453_v56 }
 0x8b9   : > { %v2573_v57 = vadd.f32 %v2074_v42, %v1432_v2 }
 0x8ba   : > { %v1469_v25 = vor.u32 1.1754944e-38, %v1468_v16  ;;  %vm1467_vm7 = vcmp.eq.f32.partialorder %v1466_v17, 8.507059e+37 }
 0x8bb   : > { %v1920_v58 = vmul.f32 -1.702, %v2573_v57 }
 0x8bd   : > { %v2087_v59 = vpop.eup %2086  ;;  %v1449_v60 = vmul.f32 1.442695, %v1920_v58  ;;  %v1521_v58 = vld [vmem:[#allocation6] sm:$0xff] }
 0x8be   : > { %v2089_v61 = vpop.eup %2088  ;;  %v1454_v63 = vadd.f32 1.0, %v2087_v59 }
 0x8bf   : > { %v1458_v0 = vmul.f32 %v2089_v61, %v1453_v56  ;;  %2090 = vpow2.f32 %v1449_v60  ;;  %vm1463_vm15 = vweird.f32 %v2089_v61 }
 0x8c0   : > { %2092 = vrcp.f32 %v1454_v63  ;;  %v1434_v1 = vpop.f32.mrf.mxu1  ;;  %vm1464_vm5 = vmor %vm1462_vm4, %vm1463_vm15  ;;  %v1483_v19 = vand.u32 2147483648, %v1454_v63  ;;  %v1481_v24 = vand.u32 2147483647, %v1454_v63  ;;  %vm1477_vm8 = vweird.f32 %v1454_v63 }
 0x8c1   : > { %v1459_v3 = vsub.f32 1.0, %v1458_v0  ;;  %v2576_v4 = vadd.f32 %v2074_v42, %v1434_v1 }
 0x8c2   : > { %v1484_v31 = vor.u32 1.1754944e-38, %v1483_v19  ;;  %vm1482_vm10 = vcmp.eq.f32.partialorder %v1481_v24, 8.507059e+37 }
 0x8c3   : > { %v1460_v6 = vmul.f32 %v2089_v61, %v1459_v3  ;;  %v1921_v7 = vmul.f32 -1.702, %v2576_v4 }
 0x8c5   : > { %v2091_v8 = vpop.eup %2090  ;;  %v1451_v9 = vmul.f32 1.442695, %v1921_v7  ;;  %v1461_v15 = vadd.f32 %v2089_v61, %v1460_v6 }
 0x8c6   : > { %v2093_v12 = vpop.eup %2092  ;;  %v1455_v14 = vadd.f32 1.0, %v2091_v8 }
 0x8c7   : > { %v1473_v23 = vmul.f32 %v2093_v12, %v1454_v63  ;;  %2094 = vpow2.f32 %v1451_v9  ;;  %v1465_v20 = vsel %vm1464_vm5, %v2089_v61, %v1461_v15  ;;  %vm1478_vm6 = vweird.f32 %v2093_v12  ;;  %v1522_v61 = vld [vmem:[#allocation6 + $0x8] sm:$0xff]  ;;  %v1524_v9 = vld [vmem:[#allocation6 + $0x18] sm:$0xff] }
 0x8c8   : > { %2096 = vrcp.f32 %v1455_v14  ;;  %v1470_v30 = vsel %vm1467_vm7, %v1469_v25, %v1465_v20  ;;  %vm1479_vm9 = vmor %vm1477_vm8, %vm1478_vm6  ;;  %v1498_v42 = vand.u32 2147483648, %v1455_v14  ;;  %vm1492_vm12 = vweird.f32 %v1455_v14 }
 0x8c9   : > { %v1474_v18 = vsub.f32 1.0, %v1473_v23  ;;  %v1517_v28 = vmul.f32 %v1470_v30, %v2564_v46  ;;  %v1496_v43 = vand.u32 2147483647, %v1455_v14 }
 0x8ca   : > { %v1499_v50 = vor.u32 1.1754944e-38, %v1498_v42 }
 0x8cb   : > { %v1475_v21 = vmul.f32 %v2093_v12, %v1474_v18  ;;  %vm1497_vm0 = vcmp.eq.f32.partialorder %v1496_v43, 8.507059e+37 }
 0x8cd   : > { %v2095_v26 = vpop.eup %2094  ;;  %v1476_v27 = vadd.f32 %v2093_v12, %v1475_v21 }
 0x8ce   : > { %v2097_v22 = vpop.eup %2096  ;;  %v1456_v29 = vadd.f32 1.0, %v2095_v26 }
 0x8cf   : > { %v1480_v32 = vsel %vm1479_vm9, %v2093_v12, %v1476_v27  ;;  %v1488_v34 = vmul.f32 %v2097_v22, %v1455_v14  ;;  %vm1493_vm11 = vweird.f32 %v2097_v22 }
 0x8d0   : > { %v1485_v35 = vsel %vm1482_vm10, %v1484_v31, %v1480_v32  ;;  %2098 = vrcp.f32 %v1456_v29  ;;  %vm1494_vm13 = vmor %vm1492_vm12, %vm1493_vm11  ;;  %v1513_v47 = vand.u32 2147483648, %v1456_v29  ;;  %v1511_v46 = vand.u32 2147483647, %v1456_v29 }
 0x8d1   : > { %v1518_v36 = vmul.f32 %v1485_v35, %v2569_v51  ;;  %v1489_v37 = vsub.f32 1.0, %v1488_v34  ;;  %vm1507_vm2 = vweird.f32 %v1456_v29 }
 0x8d2   : > { %v1514_v52 = vor.u32 1.1754944e-38, %v1513_v47  ;;  %vm1512_vm15 = vcmp.eq.f32.partialorder %v1511_v46, 8.507059e+37 }
 0x8d3   : > { %v1490_v40 = vmul.f32 %v2097_v22, %v1489_v37  ;;  %v1525_v38 = vpack.c.bf16 %v1518_v36, %v1517_v28 }
 0x8d5   : > { %1599 = vmatmul.bf16.vlgmr.msra.gmra.mxu2 %v1525_v38  ;;  %v1491_v33 = vadd.f32 %v2097_v22, %v1490_v40 }
 0x8d6   : > { %v2099_v41 = vpop.eup %2098 }
 0x8d7   : > { %v1503_v39 = vmul.f32 %v2099_v41, %v1456_v29  ;;  %v1495_v48 = vsel %vm1494_vm13, %v2097_v22, %v1491_v33  ;;  %vm1508_vm14 = vweird.f32 %v2099_v41 }
 0x8d8   : > { %v1500_v51 = vsel %vm1497_vm0, %v1499_v50, %v1495_v48  ;;  %vm1509_vm3 = vmor %vm1507_vm2, %vm1508_vm14 }
 0x8d9   : > { %v1504_v44 = vsub.f32 1.0, %v1503_v39  ;;  %v1519_v55 = vmul.f32 %v1500_v51, %v2573_v57  ;;  %v1523_v57 = vld [vmem:[#allocation6 + $0x10] sm:$0xff] }
 0x8db   : > { %v1505_v49 = vmul.f32 %v2099_v41, %v1504_v44 }
 0x8dd   : > { %v1506_v45 = vadd.f32 %v2099_v41, %v1505_v49 }
 0x8df   : > { %v1510_v53 = vsel %vm1509_vm3, %v2099_v41, %v1506_v45 }
 0x8e0   : > { %v1515_v54 = vsel %vm1512_vm15, %v1514_v52, %v1510_v53 }
 0x8e1   : > { %v1520_v56 = vmul.f32 %v1515_v54, %v2576_v4 }
 0x8e3   : > { %v1526_v2 = vpack.c.bf16 %v1520_v56, %v1519_v55 }
 0x8e5   : > { %1604 = vmatmul.bf16.vlgmr.msra.gmra.mxu3 %v1526_v2 }
 0x958   : > { %v1600_v59 = vpop.f32.mrf.mxu2 }
 0x959   : > { %v1610_v60 = vadd.f32 %v1600_v59, %v1521_v58 }
 0x95b   : > { %1614 = vst.msk [vmem:[#allocation6] sm:$0xff] %vm691_vm1, %v1610_v60 }
 0x960   : > { %v1602_v63 = vpop.f32.mrf.mxu2 }
 0x961   : > { %v1611_v0 = vadd.f32 %v1602_v63, %v1522_v61 }
 0x962   : > { %v1622_v1 = vld [vmem:[#allocation6] sm:$0xff] }
 0x963   : > { %v1626_v3 = vadd.f32 %v1622_v1, %v2486_v62  ;;  %1615 = vst.msk [vmem:[#allocation6 + $0x8] sm:$0xff] %vm691_vm1, %v1611_v0 }
 0x965   : > { %1630 = vst.msk [vmem:[#allocation7] sm:$0xff] %vm691_vm1, %v1626_v3 }
 0x968   : > { %v1605_v6 = vpop.f32.mrf.mxu3 }
 0x969   : > { %v1612_v4 = vadd.f32 %v1605_v6, %v1523_v57 }
 0x96a   : > { %v1623_v7 = vld [vmem:[#allocation6 + $0x8] sm:$0xff] }
 0x96b   : > { %v1627_v8 = vadd.f32 %v1623_v7, %v2491_v5  ;;  %1616 = vst.msk [vmem:[#allocation6 + $0x10] sm:$0xff] %vm691_vm1, %v1612_v4 }
 0x96d   : > { %1631 = vst.msk [vmem:[#allocation7 + $0x8] sm:$0xff] %vm691_vm1, %v1627_v8 }
 0x970   : > { %v1607_v10 = vpop.f32.mrf.mxu3 }
 0x971   : > { %v1613_v12 = vadd.f32 %v1607_v10, %v1524_v9 }
 0x972   : > { %v1624_v14 = vld [vmem:[#allocation6 + $0x10] sm:$0xff] }
 0x973   : > { %v1628_v62 = vadd.f32 %v1624_v14, %v2496_v11  ;;  %1617 = vst.msk [vmem:[#allocation6 + $0x18] sm:$0xff] %vm691_vm1, %v1613_v12 }
 0x975   : > { %1632 = vst.msk [vmem:[#allocation7 + $0x10] sm:$0xff] %vm691_vm1, %v1628_v62 }
 0x979   : > { %1637 = sbr.rel (%p1954_p7) target bundleno = 2438 (0x986), region = 91 }
 0x97a   : > { %v1625_v15 = vld [vmem:[#allocation6 + $0x18] sm:$0xff] }
 0x97b   : > { %v1629_v23 = vadd.f32 %v1625_v15, %v2501_v13 }
 0x97d   : > { %1633 = vst.msk [vmem:[#allocation7 + $0x18] sm:$0xff] %vm691_vm1, %v1629_v23 }
 0x97e   : > { %v1638_v5 = vld [vmem:[#allocation7] sm:$0xff]  ;;  %v1639_v16 = vld [vmem:[#allocation7 + $0x8] sm:$0xff]  ;;  %v1640_v17 = vld [vmem:[#allocation7 + $0x10] sm:$0xff] }
 0x97f   : > { %1642 = vst.msk [vmem:[#allocation8] sm:$0xff] %vm691_vm1, %v1638_v5 }
 0x980   : > { %1643 = vst.msk [vmem:[#allocation8 + $0x8] sm:$0xff] %vm691_vm1, %v1639_v16 }
 0x981   : > { %1644 = vst.msk [vmem:[#allocation8 + $0x10] sm:$0xff] %vm691_vm1, %v1640_v17 }
 0x984   : > { %v1641_v18 = vld [vmem:[#allocation7 + $0x18] sm:$0xff] }
 0x985   : > { %1645 = vst.msk [vmem:[#allocation8 + $0x18] sm:$0xff] %vm691_vm1, %v1641_v18 }
 0x986 PF: > { %s2658_s18 = sld [smem:[#allocation12_spill]]  ;;  %s2174_s21 = smov [#allocation8]  }
 0x987   : > { %s2660_s29 = sld [smem:[#allocation18_spill]]  ;;  %s1654_s24 = sshll.u32 %s2174_s21, 4  ;;  %s1655_s24 = int_to_ptr.vmem [resolvable:$true] %s1654_s24 }
 0x988   : > { %s2175_s27 = smov 128   ;;  %s2176_s23 = smov 8  }
 0x98c   : > { %s2659_s26 = sadd.s32 4294967295, %s2658_s18  }
 0x98d   : > { %p1995_p8 = scmp.eq.s32.totalorder %s2659_s26, 1  ;;  %s1656_s15 = sshll.u32 %s2660_s29, 4  ;;  %s1657_s15 = int_to_ptr.hbm [resolvable:$true] %s1656_s15 }
 0x98f   : > { %1992 = dma.vmem_to_hbm [thread:$0]  (%p1995_p8), %s1655_s24, 512, %s1657_s15, [#allocation9], %s2175_s27, %s2175_s27, %s2176_s23  }
 0x990   : > { %2145 = dma.done.wait (%p1995_p8), [#allocation9], 512  }
 0x991   : > { %2147 = vsyncadd (%p1995_p8), [#allocation9], 4294966784 }
 0x992 PF: > { %s2661_s25 = sld [smem:[#allocation12_spill]] }
 0x993   : > { %s2662_s29 = sld [smem:[#allocation11_spill]] }
 0x994   : > { %s2663_s30 = sld [smem:[#allocation13_spill]] }
 0x998   : > { %s25_s15 = sadd.s32 1, %s2661_s25  }
 0x999   : > { %p22_p9 = scmp.ge.s32.totalorder %s25_s15, 4  }
 0x99b   :  { %24 = sbr.rel (!%p22_p9) target bundleno = 7 (0x7), region = 170 }
 0x9a0   :  { %1673 = vsyncpa [#allocation9], 1 }
 0x9a1   :  { %1675 = vsyncpa [#allocation9 + $0x1], 1 }

</bundles_post_ra>
